<compile_context>
chip_gen: v5e
topology: v5e:2x2
jax: 0.10.0
libtpu: 0.0.40
codegen_flags: <defaults>
</compile_context>

<pallas_src>
import functools

import jax
import jax.numpy as jnp
from jax.experimental import pallas as pl
from jax.experimental.pallas import tpu as pltpu


def lstm_fused_kernel(x_ref, wx_ref, bx_ref, whh_ref, wo_ref, bo_ref,
                      out_ref, gx_scr, h_all_scr, *, seq_len, batch_pad):
    """Single-invocation fused LSTMModel forward.

    x_ref:   (T*Bp, D_in)      time-major, batch padded to Bp (multiple of 8)
    wx_ref:  (4, D_in, H)      per-gate input weights (input projection folded in)
    bx_ref:  (4, 1, H)         per-gate combined bias (bp@Wih^T + b_ih + b_hh)
    whh_ref: (4, H, H)         per-gate recurrent weights
    wo_ref:  (H, n_out_pad)    output projection weight, lane-padded to 128
    bo_ref:  (1, n_out_pad)
    out_ref: (T*Bp, n_out_pad)
    gx_scr:  (4, T*Bp, H)      VMEM scratch: precomputed x-path gate pre-activations
    h_all_scr: (T*Bp, H)       VMEM scratch: all hidden states
    """
    T, Bp = seq_len, batch_pad
    H = whh_ref.shape[1]

    # ---- Phase 1: batched (non-recurrent) input-path matmuls for all T ------
    # One well-shaped (T*Bp, D_in) x (D_in, H) matmul per gate; bias added once.
    x_all = x_ref[...]
    for g in range(4):
        gx_scr[g] = (jnp.dot(x_all, wx_ref[g],
                             preferred_element_type=jnp.float32)
                     + bx_ref[g])

    # Hoist recurrent weights out of the (statically unrolled) time loop.
    whh_i = whh_ref[0]
    whh_f = whh_ref[1]
    whh_g = whh_ref[2]
    whh_o = whh_ref[3]

    # ---- Phase 2: sequential recurrence (only h@W_hh + elementwise) ---------
    # TODO(synk): for very long T, chunk time across a grid axis instead of a
    # full static unroll (here T is small, so a single unrolled loop is best).
    h = jnp.zeros((Bp, H), jnp.float32)
    c = jnp.zeros((Bp, H), jnp.float32)
    for t in range(T):
        r0 = t * Bp  # static, sublane-aligned (Bp is a multiple of 8)
        i_g = jax.nn.sigmoid(
            gx_scr[0, r0:r0 + Bp, :]
            + jnp.dot(h, whh_i, preferred_element_type=jnp.float32))
        f_g = jax.nn.sigmoid(
            gx_scr[1, r0:r0 + Bp, :]
            + jnp.dot(h, whh_f, preferred_element_type=jnp.float32))
        g_g = jnp.tanh(
            gx_scr[2, r0:r0 + Bp, :]
            + jnp.dot(h, whh_g, preferred_element_type=jnp.float32))
        o_g = jax.nn.sigmoid(
            gx_scr[3, r0:r0 + Bp, :]
            + jnp.dot(h, whh_o, preferred_element_type=jnp.float32))
        c = f_g * c + i_g * g_g
        h = o_g * jnp.tanh(c)
        h_all_scr[r0:r0 + Bp, :] = h

    # ---- Phase 3: batched output projection, single lane-dense store --------
    out_ref[...] = (jnp.dot(h_all_scr[...], wo_ref[...],
                            preferred_element_type=jnp.float32)
                    + bo_ref[...]).astype(out_ref.dtype)


def lstm_model_forward(spikes, velocities, params, n_neurons, n_fr_bins):
    """spikes: (B, T, n_neurons); velocities: (B, T, vel_dim).
    Returns (B, T, n_neurons, n_fr_bins), matching the PyTorch module."""
    B, T, _ = spikes.shape
    wp_t, bp, wih_t, whh_t, bg, wo_t, bo = params
    D_in = wp_t.shape[0]
    H = wp_t.shape[1]
    n_out = wo_t.shape[1]

    # --- parameter fusion / layout prep (exact linear algebra, done once) ----
    # Fold input projection into LSTM input weights:
    #   (x @ Wp^T + bp) @ Wih^T  ==  x @ (Wp^T Wih^T) + (bp @ Wih^T)
    w_comb = wp_t @ wih_t                                      # (D_in, 4H)
    b_comb = bp @ wih_t + bg                                   # (1, 4H)
    # Per-gate stacking (PyTorch gate order i, f, g, o along the 4H axis).
    wx = jnp.transpose(w_comb.reshape(D_in, 4, H), (1, 0, 2))  # (4, D_in, H)
    bx = jnp.transpose(b_comb.reshape(1, 4, H), (1, 0, 2))     # (4, 1, H)
    whh = jnp.transpose(whh_t.reshape(H, 4, H), (1, 0, 2))     # (4, H, H)
    # Lane-dense output: pad n_out up to a multiple of 128 (sliced off below).
    n_out_pad = ((n_out + 127) // 128) * 128
    wo_pad = jnp.pad(wo_t, ((0, 0), (0, n_out_pad - n_out)))
    bo_pad = jnp.pad(bo, ((0, 0), (0, n_out_pad - n_out)))

    # --- input prep: concat, time-major, pad batch to full sublanes (8) ------
    x = jnp.concatenate([spikes, velocities.reshape(B, T, -1)], axis=2)
    x_tm = jnp.transpose(x, (1, 0, 2)).astype(jnp.float32)     # (T, B, D_in)
    Bp = ((B + 7) // 8) * 8
    x_tm = jnp.pad(x_tm, ((0, 0), (0, Bp - B), (0, 0)))        # zero-pad batch
    x_all = x_tm.reshape(T * Bp, D_in)

    kernel = functools.partial(lstm_fused_kernel, seq_len=T, batch_pad=Bp)
    full = lambda shape: pl.BlockSpec(shape, lambda i: tuple(0 for _ in shape))

    out_pad = pl.pallas_call(
        kernel,
        out_shape=jax.ShapeDtypeStruct((T * Bp, n_out_pad), jnp.float32),
        grid_spec=pltpu.PrefetchScalarGridSpec(
            num_scalar_prefetch=0,
            grid=(1,),                       # single invocation: no per-step grid overhead
            in_specs=[
                full((T * Bp, D_in)),        # x, all time steps resident in VMEM
                full((4, D_in, H)),          # per-gate folded input weights
                full((4, 1, H)),             # per-gate combined bias
                full((4, H, H)),             # per-gate recurrent weights
                full((H, n_out_pad)),        # output projection weight (padded)
                full((1, n_out_pad)),        # output projection bias (padded)
            ],
            out_specs=full((T * Bp, n_out_pad)),
            scratch_shapes=[
                pltpu.VMEM((4, T * Bp, H), jnp.float32),   # gates_x for all T
                pltpu.VMEM((T * Bp, H), jnp.float32),      # all hidden states
            ],
        ),
        compiler_params=pltpu.CompilerParams(
            dimension_semantics=("arbitrary",)),
    )(x_all, wx, bx, whh, wo_pad, bo_pad)

    out = out_pad.reshape(T, Bp, n_out_pad)[:, :B, :n_out]     # strip padding
    out = jnp.transpose(out, (1, 0, 2))                        # (B, T, n_out)
    return out.reshape(B, T, n_neurons, n_fr_bins)


def reference_forward(spikes, velocities, params, n_neurons, n_fr_bins):
    """Pure-JAX reference (mirrors torch.nn.LSTM math) for a sanity check."""
    wp_t, bp, wih_t, whh_t, bg, wo_t, bo = params
    B, T, _ = spikes.shape
    H = wp_t.shape[1]
    x = jnp.concatenate([spikes, velocities.reshape(B, T, -1)], axis=2)
    xp = x @ wp_t + bp                                         # (B, T, H)

    def step(carry, x_t):
        h, c = carry
        gates = x_t @ wih_t + h @ whh_t + bg
        i = jax.nn.sigmoid(gates[:, 0 * H:1 * H])
        f = jax.nn.sigmoid(gates[:, 1 * H:2 * H])
        g = jnp.tanh(gates[:, 2 * H:3 * H])
        o = jax.nn.sigmoid(gates[:, 3 * H:4 * H])
        c = f * c + i * g
        h = o * jnp.tanh(c)
        return (h, c), h

    h0 = jnp.zeros((B, H), jnp.float32)
    (_, _), hs = jax.lax.scan(step, (h0, h0), jnp.transpose(xp, (1, 0, 2)))
    hs = jnp.transpose(hs, (1, 0, 2))                          # (B, T, H)
    y = hs @ wo_t + bo
    return y.reshape(B, T, n_neurons, n_fr_bins)


def init_params(key, input_size, hidden_size, n_neurons, n_fr_bins):
    """Deterministic synthetic parameters (shapes match the nn.Module)."""
    n_out = n_neurons * n_fr_bins
    ks = jax.random.split(key, 8)
    s = 0.1
    wp = s * jax.random.normal(ks[0], (hidden_size, input_size), jnp.float32)
    bp = s * jax.random.normal(ks[1], (1, hidden_size), jnp.float32)
    wih = s * jax.random.normal(ks[2], (4 * hidden_size, hidden_size), jnp.float32)
    whh = s * jax.random.normal(ks[3], (4 * hidden_size, hidden_size), jnp.float32)
    bih = s * jax.random.normal(ks[4], (4 * hidden_size,), jnp.float32)
    bhh = s * jax.random.normal(ks[5], (4 * hidden_size,), jnp.float32)
    wo = s * jax.random.normal(ks[6], (n_out, hidden_size), jnp.float32)
    bo = s * jax.random.normal(ks[7], (1, n_out), jnp.float32)
    # Pre-transpose Linear/LSTM weights (PyTorch stores W as (out, in); math is x @ W^T).
    return (wp.T, bp, wih.T, whh.T, (bih + bhh)[None, :], wo.T, bo)


if __name__ == "__main__":
    # Small shapes: batch=2, seq=8, n_neurons=12, n_fr_bins=4, vel_dim=2, hidden=32
    B, T = 2, 8
    n_neurons, n_fr_bins = 12, 4
    vel_dim = 2
    hidden_size = 32
    input_size = n_neurons + vel_dim          # concat(spikes, velocities) feature dim

    key = jax.random.PRNGKey(0)
    k_sp, k_vel, k_par = jax.random.split(key, 3)
    spikes = jax.random.normal(k_sp, (B, T, n_neurons), jnp.float32)
    velocities = jax.random.normal(k_vel, (B, T, vel_dim), jnp.float32)
    params = init_params(k_par, input_size, hidden_size, n_neurons, n_fr_bins)

    out = lstm_model_forward(spikes, velocities, params, n_neurons, n_fr_bins)
    out = jax.block_until_ready(out)

    ref = reference_forward(spikes, velocities, params, n_neurons, n_fr_bins)
    assert out.shape == (B, T, n_neurons, n_fr_bins), out.shape
    assert jnp.allclose(out, ref, atol=1e-4, rtol=1e-4), \
        float(jnp.max(jnp.abs(out - ref)))

    print("KERNEL_OK")
</pallas_src>

<mosaic_0001>
module attributes {stable_mosaic.version = 11 : i64} {
  func.func @lstm_fused_kernel(%arg0: i32, %arg1: memref<64x14xf32, #tpu.memory_space<vmem>>, %arg2: memref<4x14x32xf32, #tpu.memory_space<vmem>>, %arg3: memref<4x1x32xf32, #tpu.memory_space<vmem>>, %arg4: memref<4x32x32xf32, #tpu.memory_space<vmem>>, %arg5: memref<32x128xf32, #tpu.memory_space<vmem>>, %arg6: memref<1x128xf32, #tpu.memory_space<vmem>>, %arg7: memref<64x128xf32, #tpu.memory_space<vmem>>, %arg8: memref<4x64x32xf32, #tpu.memory_space<vmem>>, %arg9: memref<64x32xf32, #tpu.memory_space<vmem>>) attributes {dimension_semantics = [#tpu.dimension_semantics<arbitrary>], iteration_bounds = array<i64: 1>, scalar_prefetch = 0 : i64, scratch_operands = 2 : i64, tpu.core_type = #tpu.core_type<tc>, window_params = [{pipeline_mode = #tpu.pipeline_mode<synchronous>, transform_indices = @transform_0, window_bounds = array<i64: 64, 14>}, {pipeline_mode = #tpu.pipeline_mode<synchronous>, transform_indices = @transform_1, window_bounds = array<i64: 4, 14, 32>}, {pipeline_mode = #tpu.pipeline_mode<synchronous>, transform_indices = @transform_2, window_bounds = array<i64: 4, 1, 32>}, {pipeline_mode = #tpu.pipeline_mode<synchronous>, transform_indices = @transform_3, window_bounds = array<i64: 4, 32, 32>}, {pipeline_mode = #tpu.pipeline_mode<synchronous>, transform_indices = @transform_4, window_bounds = array<i64: 32, 128>}, {pipeline_mode = #tpu.pipeline_mode<synchronous>, transform_indices = @transform_5, window_bounds = array<i64: 1, 128>}, {pipeline_mode = #tpu.pipeline_mode<synchronous>, transform_indices = @transform_6, window_bounds = array<i64: 64, 128>}]} {
    %c0 = arith.constant 0 : index
    %c0_0 = arith.constant 0 : index
    %0 = vector.load %arg1[%c0, %c0_0] : memref<64x14xf32, #tpu.memory_space<vmem>>, vector<64x14xf32>
    %c0_1 = arith.constant 0 : index
    %c0_2 = arith.constant 0 : index
    %c0_3 = arith.constant 0 : index
    %1 = vector.load %arg2[%c0_1, %c0_2, %c0_3] : memref<4x14x32xf32, #tpu.memory_space<vmem>>, vector<1x14x32xf32>
    %2 = vector.shape_cast %1 : vector<1x14x32xf32> to vector<14x32xf32>
    %cst = arith.constant dense<0.000000e+00> : vector<64x32xf32>
    %3 = tpu.matmul %0, %2, %cst {dimension_numbers = #tpu.dot_dimension_numbers<[1], [0], [0], [1], [0, 0, 1, 1], [], []>} : vector<64x14xf32>, vector<14x32xf32>, vector<64x32xf32> -> vector<64x32xf32>
    %c0_4 = arith.constant 0 : index
    %c0_5 = arith.constant 0 : index
    %c0_6 = arith.constant 0 : index
    %4 = vector.load %arg3[%c0_4, %c0_5, %c0_6] : memref<4x1x32xf32, #tpu.memory_space<vmem>>, vector<1x1x32xf32>
    %5 = vector.shape_cast %4 : vector<1x1x32xf32> to vector<1x32xf32>
    %6 = vector.broadcast %5 : vector<1x32xf32> to vector<64x32xf32>
    %7 = arith.addf %3, %6 : vector<64x32xf32>
    %c0_7 = arith.constant 0 : index
    %c0_8 = arith.constant 0 : index
    %c0_9 = arith.constant 0 : index
    %8 = vector.load %arg8[%c0_7, %c0_8, %c0_9] : memref<4x64x32xf32, #tpu.memory_space<vmem>>, vector<1x64x32xf32>
    %9 = vector.shape_cast %8 : vector<1x64x32xf32> to vector<64x32xf32>
    %10 = vector.shape_cast %7 : vector<64x32xf32> to vector<1x64x32xf32>
    tpu.vector_store %arg8[%c0_7, %c0_8, %c0_9], %10 {strides = array<i32>} : memref<4x64x32xf32, #tpu.memory_space<vmem>>, vector<1x64x32xf32>,
    %c1 = arith.constant 1 : index
    %c0_10 = arith.constant 0 : index
    %c0_11 = arith.constant 0 : index
    %11 = vector.load %arg2[%c1, %c0_10, %c0_11] : memref<4x14x32xf32, #tpu.memory_space<vmem>>, vector<1x14x32xf32>
    %12 = vector.shape_cast %11 : vector<1x14x32xf32> to vector<14x32xf32>
    %cst_12 = arith.constant dense<0.000000e+00> : vector<64x32xf32>
    %13 = tpu.matmul %0, %12, %cst_12 {dimension_numbers = #tpu.dot_dimension_numbers<[1], [0], [0], [1], [0, 0, 1, 1], [], []>} : vector<64x14xf32>, vector<14x32xf32>, vector<64x32xf32> -> vector<64x32xf32>
    %c1_13 = arith.constant 1 : index
    %c0_14 = arith.constant 0 : index
    %c0_15 = arith.constant 0 : index
    %14 = vector.load %arg3[%c1_13, %c0_14, %c0_15] : memref<4x1x32xf32, #tpu.memory_space<vmem>>, vector<1x1x32xf32>
    %15 = vector.shape_cast %14 : vector<1x1x32xf32> to vector<1x32xf32>
    %16 = vector.broadcast %15 : vector<1x32xf32> to vector<64x32xf32>
    %17 = arith.addf %13, %16 : vector<64x32xf32>
    %c1_16 = arith.constant 1 : index
    %c0_17 = arith.constant 0 : index
    %c0_18 = arith.constant 0 : index
    %18 = vector.load %arg8[%c1_16, %c0_17, %c0_18] : memref<4x64x32xf32, #tpu.memory_space<vmem>>, vector<1x64x32xf32>
    %19 = vector.shape_cast %18 : vector<1x64x32xf32> to vector<64x32xf32>
    %20 = vector.shape_cast %17 : vector<64x32xf32> to vector<1x64x32xf32>
    tpu.vector_store %arg8[%c1_16, %c0_17, %c0_18], %20 {strides = array<i32>} : memref<4x64x32xf32, #tpu.memory_space<vmem>>, vector<1x64x32xf32>,
    %c2 = arith.constant 2 : index
    %c0_19 = arith.constant 0 : index
    %c0_20 = arith.constant 0 : index
    %21 = vector.load %arg2[%c2, %c0_19, %c0_20] : memref<4x14x32xf32, #tpu.memory_space<vmem>>, vector<1x14x32xf32>
    %22 = vector.shape_cast %21 : vector<1x14x32xf32> to vector<14x32xf32>
    %cst_21 = arith.constant dense<0.000000e+00> : vector<64x32xf32>
    %23 = tpu.matmul %0, %22, %cst_21 {dimension_numbers = #tpu.dot_dimension_numbers<[1], [0], [0], [1], [0, 0, 1, 1], [], []>} : vector<64x14xf32>, vector<14x32xf32>, vector<64x32xf32> -> vector<64x32xf32>
    %c2_22 = arith.constant 2 : index
    %c0_23 = arith.constant 0 : index
    %c0_24 = arith.constant 0 : index
    %24 = vector.load %arg3[%c2_22, %c0_23, %c0_24] : memref<4x1x32xf32, #tpu.memory_space<vmem>>, vector<1x1x32xf32>
    %25 = vector.shape_cast %24 : vector<1x1x32xf32> to vector<1x32xf32>
    %26 = vector.broadcast %25 : vector<1x32xf32> to vector<64x32xf32>
    %27 = arith.addf %23, %26 : vector<64x32xf32>
    %c2_25 = arith.constant 2 : index
    %c0_26 = arith.constant 0 : index
    %c0_27 = arith.constant 0 : index
    %28 = vector.load %arg8[%c2_25, %c0_26, %c0_27] : memref<4x64x32xf32, #tpu.memory_space<vmem>>, vector<1x64x32xf32>
    %29 = vector.shape_cast %28 : vector<1x64x32xf32> to vector<64x32xf32>
    %30 = vector.shape_cast %27 : vector<64x32xf32> to vector<1x64x32xf32>
    tpu.vector_store %arg8[%c2_25, %c0_26, %c0_27], %30 {strides = array<i32>} : memref<4x64x32xf32, #tpu.memory_space<vmem>>, vector<1x64x32xf32>,
    %c3 = arith.constant 3 : index
    %c0_28 = arith.constant 0 : index
    %c0_29 = arith.constant 0 : index
    %31 = vector.load %arg2[%c3, %c0_28, %c0_29] : memref<4x14x32xf32, #tpu.memory_space<vmem>>, vector<1x14x32xf32>
    %32 = vector.shape_cast %31 : vector<1x14x32xf32> to vector<14x32xf32>
    %cst_30 = arith.constant dense<0.000000e+00> : vector<64x32xf32>
    %33 = tpu.matmul %0, %32, %cst_30 {dimension_numbers = #tpu.dot_dimension_numbers<[1], [0], [0], [1], [0, 0, 1, 1], [], []>} : vector<64x14xf32>, vector<14x32xf32>, vector<64x32xf32> -> vector<64x32xf32>
    %c3_31 = arith.constant 3 : index
    %c0_32 = arith.constant 0 : index
    %c0_33 = arith.constant 0 : index
    %34 = vector.load %arg3[%c3_31, %c0_32, %c0_33] : memref<4x1x32xf32, #tpu.memory_space<vmem>>, vector<1x1x32xf32>
    %35 = vector.shape_cast %34 : vector<1x1x32xf32> to vector<1x32xf32>
    %36 = vector.broadcast %35 : vector<1x32xf32> to vector<64x32xf32>
    %37 = arith.addf %33, %36 : vector<64x32xf32>
    %c3_34 = arith.constant 3 : index
    %c0_35 = arith.constant 0 : index
    %c0_36 = arith.constant 0 : index
    %38 = vector.load %arg8[%c3_34, %c0_35, %c0_36] : memref<4x64x32xf32, #tpu.memory_space<vmem>>, vector<1x64x32xf32>
    %39 = vector.shape_cast %38 : vector<1x64x32xf32> to vector<64x32xf32>
    %40 = vector.shape_cast %37 : vector<64x32xf32> to vector<1x64x32xf32>
    tpu.vector_store %arg8[%c3_34, %c0_35, %c0_36], %40 {strides = array<i32>} : memref<4x64x32xf32, #tpu.memory_space<vmem>>, vector<1x64x32xf32>,
    %c0_37 = arith.constant 0 : index
    %c0_38 = arith.constant 0 : index
    %c0_39 = arith.constant 0 : index
    %41 = vector.load %arg4[%c0_37, %c0_38, %c0_39] : memref<4x32x32xf32, #tpu.memory_space<vmem>>, vector<1x32x32xf32>
    %42 = vector.shape_cast %41 : vector<1x32x32xf32> to vector<32x32xf32>
    %c1_40 = arith.constant 1 : index
    %c0_41 = arith.constant 0 : index
    %c0_42 = arith.constant 0 : index
    %43 = vector.load %arg4[%c1_40, %c0_41, %c0_42] : memref<4x32x32xf32, #tpu.memory_space<vmem>>, vector<1x32x32xf32>
    %44 = vector.shape_cast %43 : vector<1x32x32xf32> to vector<32x32xf32>
    %c2_43 = arith.constant 2 : index
    %c0_44 = arith.constant 0 : index
    %c0_45 = arith.constant 0 : index
    %45 = vector.load %arg4[%c2_43, %c0_44, %c0_45] : memref<4x32x32xf32, #tpu.memory_space<vmem>>, vector<1x32x32xf32>
    %46 = vector.shape_cast %45 : vector<1x32x32xf32> to vector<32x32xf32>
    %c3_46 = arith.constant 3 : index
    %c0_47 = arith.constant 0 : index
    %c0_48 = arith.constant 0 : index
    %47 = vector.load %arg4[%c3_46, %c0_47, %c0_48] : memref<4x32x32xf32, #tpu.memory_space<vmem>>, vector<1x32x32xf32>
    %48 = vector.shape_cast %47 : vector<1x32x32xf32> to vector<32x32xf32>
    %cst_49 = arith.constant 0.000000e+00 : f32
    %49 = vector.broadcast %cst_49 : f32 to vector<8x32xf32>
    %cst_50 = arith.constant 0.000000e+00 : f32
    %50 = vector.broadcast %cst_50 : f32 to vector<8x32xf32>
    %c0_51 = arith.constant 0 : index
    %c0_52 = arith.constant 0 : index
    %c0_53 = arith.constant 0 : index
    %51 = vector.load %arg8[%c0_51, %c0_52, %c0_53] : memref<4x64x32xf32, #tpu.memory_space<vmem>>, vector<1x8x32xf32>
    %52 = vector.shape_cast %51 : vector<1x8x32xf32> to vector<8x32xf32>
    %cst_54 = arith.constant dense<0.000000e+00> : vector<8x32xf32>
    %53 = tpu.matmul %49, %42, %cst_54 {dimension_numbers = #tpu.dot_dimension_numbers<[1], [0], [0], [1], [0, 0, 1, 1], [], []>} : vector<8x32xf32>, vector<32x32xf32>, vector<8x32xf32> -> vector<8x32xf32>
    %54 = arith.addf %52, %53 : vector<8x32xf32>
    %55 = arith.negf %54 : vector<8x32xf32>
    %56 = math.exp %55 : vector<8x32xf32>
    %cst_55 = arith.constant 1.000000e+00 : f32
    %57 = vector.broadcast %cst_55 : f32 to vector<8x32xf32>
    %58 = arith.addf %57, %56 : vector<8x32xf32>
    %59 = arith.divf %57, %58 : vector<8x32xf32>
    %c1_56 = arith.constant 1 : index
    %c0_57 = arith.constant 0 : index
    %c0_58 = arith.constant 0 : index
    %60 = vector.load %arg8[%c1_56, %c0_57, %c0_58] : memref<4x64x32xf32, #tpu.memory_space<vmem>>, vector<1x8x32xf32>
    %61 = vector.shape_cast %60 : vector<1x8x32xf32> to vector<8x32xf32>
    %cst_59 = arith.constant dense<0.000000e+00> : vector<8x32xf32>
    %62 = tpu.matmul %49, %44, %cst_59 {dimension_numbers = #tpu.dot_dimension_numbers<[1], [0], [0], [1], [0, 0, 1, 1], [], []>} : vector<8x32xf32>, vector<32x32xf32>, vector<8x32xf32> -> vector<8x32xf32>
    %63 = arith.addf %61, %62 : vector<8x32xf32>
    %64 = arith.negf %63 : vector<8x32xf32>
    %65 = math.exp %64 : vector<8x32xf32>
    %cst_60 = arith.constant 1.000000e+00 : f32
    %66 = vector.broadcast %cst_60 : f32 to vector<8x32xf32>
    %67 = arith.addf %66, %65 : vector<8x32xf32>
    %68 = arith.divf %66, %67 : vector<8x32xf32>
    %c2_61 = arith.constant 2 : index
    %c0_62 = arith.constant 0 : index
    %c0_63 = arith.constant 0 : index
    %69 = vector.load %arg8[%c2_61, %c0_62, %c0_63] : memref<4x64x32xf32, #tpu.memory_space<vmem>>, vector<1x8x32xf32>
    %70 = vector.shape_cast %69 : vector<1x8x32xf32> to vector<8x32xf32>
    %cst_64 = arith.constant dense<0.000000e+00> : vector<8x32xf32>
    %71 = tpu.matmul %49, %46, %cst_64 {dimension_numbers = #tpu.dot_dimension_numbers<[1], [0], [0], [1], [0, 0, 1, 1], [], []>} : vector<8x32xf32>, vector<32x32xf32>, vector<8x32xf32> -> vector<8x32xf32>
    %72 = arith.addf %70, %71 : vector<8x32xf32>
    %73 = math.tanh %72 : vector<8x32xf32>
    %c3_65 = arith.constant 3 : index
    %c0_66 = arith.constant 0 : index
    %c0_67 = arith.constant 0 : index
    %74 = vector.load %arg8[%c3_65, %c0_66, %c0_67] : memref<4x64x32xf32, #tpu.memory_space<vmem>>, vector<1x8x32xf32>
    %75 = vector.shape_cast %74 : vector<1x8x32xf32> to vector<8x32xf32>
    %cst_68 = arith.constant dense<0.000000e+00> : vector<8x32xf32>
    %76 = tpu.matmul %49, %48, %cst_68 {dimension_numbers = #tpu.dot_dimension_numbers<[1], [0], [0], [1], [0, 0, 1, 1], [], []>} : vector<8x32xf32>, vector<32x32xf32>, vector<8x32xf32> -> vector<8x32xf32>
    %77 = arith.addf %75, %76 : vector<8x32xf32>
    %78 = arith.negf %77 : vector<8x32xf32>
    %79 = math.exp %78 : vector<8x32xf32>
    %cst_69 = arith.constant 1.000000e+00 : f32
    %80 = vector.broadcast %cst_69 : f32 to vector<8x32xf32>
    %81 = arith.addf %80, %79 : vector<8x32xf32>
    %82 = arith.divf %80, %81 : vector<8x32xf32>
    %83 = arith.mulf %68, %50 : vector<8x32xf32>
    %84 = arith.mulf %59, %73 : vector<8x32xf32>
    %85 = arith.addf %83, %84 : vector<8x32xf32>
    %86 = math.tanh %85 : vector<8x32xf32>
    %87 = arith.mulf %82, %86 : vector<8x32xf32>
    %c0_70 = arith.constant 0 : index
    %c0_71 = arith.constant 0 : index
    %88 = vector.load %arg9[%c0_70, %c0_71] : memref<64x32xf32, #tpu.memory_space<vmem>>, vector<8x32xf32>
    tpu.vector_store %arg9[%c0_70, %c0_71], %87 {strides = array<i32>} : memref<64x32xf32, #tpu.memory_space<vmem>>, vector<8x32xf32>,
    %c0_72 = arith.constant 0 : index
    %c8 = arith.constant 8 : index
    %c0_73 = arith.constant 0 : index
    %89 = vector.load %arg8[%c0_72, %c8, %c0_73] : memref<4x64x32xf32, #tpu.memory_space<vmem>>, vector<1x8x32xf32>
    %90 = vector.shape_cast %89 : vector<1x8x32xf32> to vector<8x32xf32>
    %cst_74 = arith.constant dense<0.000000e+00> : vector<8x32xf32>
    %91 = tpu.matmul %87, %42, %cst_74 {dimension_numbers = #tpu.dot_dimension_numbers<[1], [0], [0], [1], [0, 0, 1, 1], [], []>} : vector<8x32xf32>, vector<32x32xf32>, vector<8x32xf32> -> vector<8x32xf32>
    %92 = arith.addf %90, %91 : vector<8x32xf32>
    %93 = arith.negf %92 : vector<8x32xf32>
    %94 = math.exp %93 : vector<8x32xf32>
    %cst_75 = arith.constant 1.000000e+00 : f32
    %95 = vector.broadcast %cst_75 : f32 to vector<8x32xf32>
    %96 = arith.addf %95, %94 : vector<8x32xf32>
    %97 = arith.divf %95, %96 : vector<8x32xf32>
    %c1_76 = arith.constant 1 : index
    %c8_77 = arith.constant 8 : index
    %c0_78 = arith.constant 0 : index
    %98 = vector.load %arg8[%c1_76, %c8_77, %c0_78] : memref<4x64x32xf32, #tpu.memory_space<vmem>>, vector<1x8x32xf32>
    %99 = vector.shape_cast %98 : vector<1x8x32xf32> to vector<8x32xf32>
    %cst_79 = arith.constant dense<0.000000e+00> : vector<8x32xf32>
    %100 = tpu.matmul %87, %44, %cst_79 {dimension_numbers = #tpu.dot_dimension_numbers<[1], [0], [0], [1], [0, 0, 1, 1], [], []>} : vector<8x32xf32>, vector<32x32xf32>, vector<8x32xf32> -> vector<8x32xf32>
    %101 = arith.addf %99, %100 : vector<8x32xf32>
    %102 = arith.negf %101 : vector<8x32xf32>
    %103 = math.exp %102 : vector<8x32xf32>
    %cst_80 = arith.constant 1.000000e+00 : f32
    %104 = vector.broadcast %cst_80 : f32 to vector<8x32xf32>
    %105 = arith.addf %104, %103 : vector<8x32xf32>
    %106 = arith.divf %104, %105 : vector<8x32xf32>
    %c2_81 = arith.constant 2 : index
    %c8_82 = arith.constant 8 : index
    %c0_83 = arith.constant 0 : index
    %107 = vector.load %arg8[%c2_81, %c8_82, %c0_83] : memref<4x64x32xf32, #tpu.memory_space<vmem>>, vector<1x8x32xf32>
    %108 = vector.shape_cast %107 : vector<1x8x32xf32> to vector<8x32xf32>
    %cst_84 = arith.constant dense<0.000000e+00> : vector<8x32xf32>
    %109 = tpu.matmul %87, %46, %cst_84 {dimension_numbers = #tpu.dot_dimension_numbers<[1], [0], [0], [1], [0, 0, 1, 1], [], []>} : vector<8x32xf32>, vector<32x32xf32>, vector<8x32xf32> -> vector<8x32xf32>
    %110 = arith.addf %108, %109 : vector<8x32xf32>
    %111 = math.tanh %110 : vector<8x32xf32>
    %c3_85 = arith.constant 3 : index
    %c8_86 = arith.constant 8 : index
    %c0_87 = arith.constant 0 : index
    %112 = vector.load %arg8[%c3_85, %c8_86, %c0_87] : memref<4x64x32xf32, #tpu.memory_space<vmem>>, vector<1x8x32xf32>
    %113 = vector.shape_cast %112 : vector<1x8x32xf32> to vector<8x32xf32>
    %cst_88 = arith.constant dense<0.000000e+00> : vector<8x32xf32>
    %114 = tpu.matmul %87, %48, %cst_88 {dimension_numbers = #tpu.dot_dimension_numbers<[1], [0], [0], [1], [0, 0, 1, 1], [], []>} : vector<8x32xf32>, vector<32x32xf32>, vector<8x32xf32> -> vector<8x32xf32>
    %115 = arith.addf %113, %114 : vector<8x32xf32>
    %116 = arith.negf %115 : vector<8x32xf32>
    %117 = math.exp %116 : vector<8x32xf32>
    %cst_89 = arith.constant 1.000000e+00 : f32
    %118 = vector.broadcast %cst_89 : f32 to vector<8x32xf32>
    %119 = arith.addf %118, %117 : vector<8x32xf32>
    %120 = arith.divf %118, %119 : vector<8x32xf32>
    %121 = arith.mulf %106, %85 : vector<8x32xf32>
    %122 = arith.mulf %97, %111 : vector<8x32xf32>
    %123 = arith.addf %121, %122 : vector<8x32xf32>
    %124 = math.tanh %123 : vector<8x32xf32>
    %125 = arith.mulf %120, %124 : vector<8x32xf32>
    %c8_90 = arith.constant 8 : index
    %c0_91 = arith.constant 0 : index
    %126 = vector.load %arg9[%c8_90, %c0_91] : memref<64x32xf32, #tpu.memory_space<vmem>>, vector<8x32xf32>
    tpu.vector_store %arg9[%c8_90, %c0_91], %125 {strides = array<i32>} : memref<64x32xf32, #tpu.memory_space<vmem>>, vector<8x32xf32>,
    %c0_92 = arith.constant 0 : index
    %c16 = arith.constant 16 : index
    %c0_93 = arith.constant 0 : index
    %127 = vector.load %arg8[%c0_92, %c16, %c0_93] : memref<4x64x32xf32, #tpu.memory_space<vmem>>, vector<1x8x32xf32>
    %128 = vector.shape_cast %127 : vector<1x8x32xf32> to vector<8x32xf32>
    %cst_94 = arith.constant dense<0.000000e+00> : vector<8x32xf32>
    %129 = tpu.matmul %125, %42, %cst_94 {dimension_numbers = #tpu.dot_dimension_numbers<[1], [0], [0], [1], [0, 0, 1, 1], [], []>} : vector<8x32xf32>, vector<32x32xf32>, vector<8x32xf32> -> vector<8x32xf32>
    %130 = arith.addf %128, %129 : vector<8x32xf32>
    %131 = arith.negf %130 : vector<8x32xf32>
    %132 = math.exp %131 : vector<8x32xf32>
    %cst_95 = arith.constant 1.000000e+00 : f32
    %133 = vector.broadcast %cst_95 : f32 to vector<8x32xf32>
    %134 = arith.addf %133, %132 : vector<8x32xf32>
    %135 = arith.divf %133, %134 : vector<8x32xf32>
    %c1_96 = arith.constant 1 : index
    %c16_97 = arith.constant 16 : index
    %c0_98 = arith.constant 0 : index
    %136 = vector.load %arg8[%c1_96, %c16_97, %c0_98] : memref<4x64x32xf32, #tpu.memory_space<vmem>>, vector<1x8x32xf32>
    %137 = vector.shape_cast %136 : vector<1x8x32xf32> to vector<8x32xf32>
    %cst_99 = arith.constant dense<0.000000e+00> : vector<8x32xf32>
    %138 = tpu.matmul %125, %44, %cst_99 {dimension_numbers = #tpu.dot_dimension_numbers<[1], [0], [0], [1], [0, 0, 1, 1], [], []>} : vector<8x32xf32>, vector<32x32xf32>, vector<8x32xf32> -> vector<8x32xf32>
    %139 = arith.addf %137, %138 : vector<8x32xf32>
    %140 = arith.negf %139 : vector<8x32xf32>
    %141 = math.exp %140 : vector<8x32xf32>
    %cst_100 = arith.constant 1.000000e+00 : f32
    %142 = vector.broadcast %cst_100 : f32 to vector<8x32xf32>
    %143 = arith.addf %142, %141 : vector<8x32xf32>
    %144 = arith.divf %142, %143 : vector<8x32xf32>
    %c2_101 = arith.constant 2 : index
    %c16_102 = arith.constant 16 : index
    %c0_103 = arith.constant 0 : index
    %145 = vector.load %arg8[%c2_101, %c16_102, %c0_103] : memref<4x64x32xf32, #tpu.memory_space<vmem>>, vector<1x8x32xf32>
    %146 = vector.shape_cast %145 : vector<1x8x32xf32> to vector<8x32xf32>
    %cst_104 = arith.constant dense<0.000000e+00> : vector<8x32xf32>
    %147 = tpu.matmul %125, %46, %cst_104 {dimension_numbers = #tpu.dot_dimension_numbers<[1], [0], [0], [1], [0, 0, 1, 1], [], []>} : vector<8x32xf32>, vector<32x32xf32>, vector<8x32xf32> -> vector<8x32xf32>
    %148 = arith.addf %146, %147 : vector<8x32xf32>
    %149 = math.tanh %148 : vector<8x32xf32>
    %c3_105 = arith.constant 3 : index
    %c16_106 = arith.constant 16 : index
    %c0_107 = arith.constant 0 : index
    %150 = vector.load %arg8[%c3_105, %c16_106, %c0_107] : memref<4x64x32xf32, #tpu.memory_space<vmem>>, vector<1x8x32xf32>
    %151 = vector.shape_cast %150 : vector<1x8x32xf32> to vector<8x32xf32>
    %cst_108 = arith.constant dense<0.000000e+00> : vector<8x32xf32>
    %152 = tpu.matmul %125, %48, %cst_108 {dimension_numbers = #tpu.dot_dimension_numbers<[1], [0], [0], [1], [0, 0, 1, 1], [], []>} : vector<8x32xf32>, vector<32x32xf32>, vector<8x32xf32> -> vector<8x32xf32>
    %153 = arith.addf %151, %152 : vector<8x32xf32>
    %154 = arith.negf %153 : vector<8x32xf32>
    %155 = math.exp %154 : vector<8x32xf32>
    %cst_109 = arith.constant 1.000000e+00 : f32
    %156 = vector.broadcast %cst_109 : f32 to vector<8x32xf32>
    %157 = arith.addf %156, %155 : vector<8x32xf32>
    %158 = arith.divf %156, %157 : vector<8x32xf32>
    %159 = arith.mulf %144, %123 : vector<8x32xf32>
    %160 = arith.mulf %135, %149 : vector<8x32xf32>
    %161 = arith.addf %159, %160 : vector<8x32xf32>
    %162 = math.tanh %161 : vector<8x32xf32>
    %163 = arith.mulf %158, %162 : vector<8x32xf32>
    %c16_110 = arith.constant 16 : index
    %c0_111 = arith.constant 0 : index
    %164 = vector.load %arg9[%c16_110, %c0_111] : memref<64x32xf32, #tpu.memory_space<vmem>>, vector<8x32xf32>
    tpu.vector_store %arg9[%c16_110, %c0_111], %163 {strides = array<i32>} : memref<64x32xf32, #tpu.memory_space<vmem>>, vector<8x32xf32>,
    %c0_112 = arith.constant 0 : index
    %c24 = arith.constant 24 : index
    %c0_113 = arith.constant 0 : index
    %165 = vector.load %arg8[%c0_112, %c24, %c0_113] : memref<4x64x32xf32, #tpu.memory_space<vmem>>, vector<1x8x32xf32>
    %166 = vector.shape_cast %165 : vector<1x8x32xf32> to vector<8x32xf32>
    %cst_114 = arith.constant dense<0.000000e+00> : vector<8x32xf32>
    %167 = tpu.matmul %163, %42, %cst_114 {dimension_numbers = #tpu.dot_dimension_numbers<[1], [0], [0], [1], [0, 0, 1, 1], [], []>} : vector<8x32xf32>, vector<32x32xf32>, vector<8x32xf32> -> vector<8x32xf32>
    %168 = arith.addf %166, %167 : vector<8x32xf32>
    %169 = arith.negf %168 : vector<8x32xf32>
    %170 = math.exp %169 : vector<8x32xf32>
    %cst_115 = arith.constant 1.000000e+00 : f32
    %171 = vector.broadcast %cst_115 : f32 to vector<8x32xf32>
    %172 = arith.addf %171, %170 : vector<8x32xf32>
    %173 = arith.divf %171, %172 : vector<8x32xf32>
    %c1_116 = arith.constant 1 : index
    %c24_117 = arith.constant 24 : index
    %c0_118 = arith.constant 0 : index
    %174 = vector.load %arg8[%c1_116, %c24_117, %c0_118] : memref<4x64x32xf32, #tpu.memory_space<vmem>>, vector<1x8x32xf32>
    %175 = vector.shape_cast %174 : vector<1x8x32xf32> to vector<8x32xf32>
    %cst_119 = arith.constant dense<0.000000e+00> : vector<8x32xf32>
    %176 = tpu.matmul %163, %44, %cst_119 {dimension_numbers = #tpu.dot_dimension_numbers<[1], [0], [0], [1], [0, 0, 1, 1], [], []>} : vector<8x32xf32>, vector<32x32xf32>, vector<8x32xf32> -> vector<8x32xf32>
    %177 = arith.addf %175, %176 : vector<8x32xf32>
    %178 = arith.negf %177 : vector<8x32xf32>
    %179 = math.exp %178 : vector<8x32xf32>
    %cst_120 = arith.constant 1.000000e+00 : f32
    %180 = vector.broadcast %cst_120 : f32 to vector<8x32xf32>
    %181 = arith.addf %180, %179 : vector<8x32xf32>
    %182 = arith.divf %180, %181 : vector<8x32xf32>
    %c2_121 = arith.constant 2 : index
    %c24_122 = arith.constant 24 : index
    %c0_123 = arith.constant 0 : index
    %183 = vector.load %arg8[%c2_121, %c24_122, %c0_123] : memref<4x64x32xf32, #tpu.memory_space<vmem>>, vector<1x8x32xf32>
    %184 = vector.shape_cast %183 : vector<1x8x32xf32> to vector<8x32xf32>
    %cst_124 = arith.constant dense<0.000000e+00> : vector<8x32xf32>
    %185 = tpu.matmul %163, %46, %cst_124 {dimension_numbers = #tpu.dot_dimension_numbers<[1], [0], [0], [1], [0, 0, 1, 1], [], []>} : vector<8x32xf32>, vector<32x32xf32>, vector<8x32xf32> -> vector<8x32xf32>
    %186 = arith.addf %184, %185 : vector<8x32xf32>
    %187 = math.tanh %186 : vector<8x32xf32>
    %c3_125 = arith.constant 3 : index
    %c24_126 = arith.constant 24 : index
    %c0_127 = arith.constant 0 : index
    %188 = vector.load %arg8[%c3_125, %c24_126, %c0_127] : memref<4x64x32xf32, #tpu.memory_space<vmem>>, vector<1x8x32xf32>
    %189 = vector.shape_cast %188 : vector<1x8x32xf32> to vector<8x32xf32>
    %cst_128 = arith.constant dense<0.000000e+00> : vector<8x32xf32>
    %190 = tpu.matmul %163, %48, %cst_128 {dimension_numbers = #tpu.dot_dimension_numbers<[1], [0], [0], [1], [0, 0, 1, 1], [], []>} : vector<8x32xf32>, vector<32x32xf32>, vector<8x32xf32> -> vector<8x32xf32>
    %191 = arith.addf %189, %190 : vector<8x32xf32>
    %192 = arith.negf %191 : vector<8x32xf32>
    %193 = math.exp %192 : vector<8x32xf32>
    %cst_129 = arith.constant 1.000000e+00 : f32
    %194 = vector.broadcast %cst_129 : f32 to vector<8x32xf32>
    %195 = arith.addf %194, %193 : vector<8x32xf32>
    %196 = arith.divf %194, %195 : vector<8x32xf32>
    %197 = arith.mulf %182, %161 : vector<8x32xf32>
    %198 = arith.mulf %173, %187 : vector<8x32xf32>
    %199 = arith.addf %197, %198 : vector<8x32xf32>
    %200 = math.tanh %199 : vector<8x32xf32>
    %201 = arith.mulf %196, %200 : vector<8x32xf32>
    %c24_130 = arith.constant 24 : index
    %c0_131 = arith.constant 0 : index
    %202 = vector.load %arg9[%c24_130, %c0_131] : memref<64x32xf32, #tpu.memory_space<vmem>>, vector<8x32xf32>
    tpu.vector_store %arg9[%c24_130, %c0_131], %201 {strides = array<i32>} : memref<64x32xf32, #tpu.memory_space<vmem>>, vector<8x32xf32>,
    %c0_132 = arith.constant 0 : index
    %c32 = arith.constant 32 : index
    %c0_133 = arith.constant 0 : index
    %203 = vector.load %arg8[%c0_132, %c32, %c0_133] : memref<4x64x32xf32, #tpu.memory_space<vmem>>, vector<1x8x32xf32>
    %204 = vector.shape_cast %203 : vector<1x8x32xf32> to vector<8x32xf32>
    %cst_134 = arith.constant dense<0.000000e+00> : vector<8x32xf32>
    %205 = tpu.matmul %201, %42, %cst_134 {dimension_numbers = #tpu.dot_dimension_numbers<[1], [0], [0], [1], [0, 0, 1, 1], [], []>} : vector<8x32xf32>, vector<32x32xf32>, vector<8x32xf32> -> vector<8x32xf32>
    %206 = arith.addf %204, %205 : vector<8x32xf32>
    %207 = arith.negf %206 : vector<8x32xf32>
    %208 = math.exp %207 : vector<8x32xf32>
    %cst_135 = arith.constant 1.000000e+00 : f32
    %209 = vector.broadcast %cst_135 : f32 to vector<8x32xf32>
    %210 = arith.addf %209, %208 : vector<8x32xf32>
    %211 = arith.divf %209, %210 : vector<8x32xf32>
    %c1_136 = arith.constant 1 : index
    %c32_137 = arith.constant 32 : index
    %c0_138 = arith.constant 0 : index
    %212 = vector.load %arg8[%c1_136, %c32_137, %c0_138] : memref<4x64x32xf32, #tpu.memory_space<vmem>>, vector<1x8x32xf32>
    %213 = vector.shape_cast %212 : vector<1x8x32xf32> to vector<8x32xf32>
    %cst_139 = arith.constant dense<0.000000e+00> : vector<8x32xf32>
    %214 = tpu.matmul %201, %44, %cst_139 {dimension_numbers = #tpu.dot_dimension_numbers<[1], [0], [0], [1], [0, 0, 1, 1], [], []>} : vector<8x32xf32>, vector<32x32xf32>, vector<8x32xf32> -> vector<8x32xf32>
    %215 = arith.addf %213, %214 : vector<8x32xf32>
    %216 = arith.negf %215 : vector<8x32xf32>
    %217 = math.exp %216 : vector<8x32xf32>
    %cst_140 = arith.constant 1.000000e+00 : f32
    %218 = vector.broadcast %cst_140 : f32 to vector<8x32xf32>
    %219 = arith.addf %218, %217 : vector<8x32xf32>
    %220 = arith.divf %218, %219 : vector<8x32xf32>
    %c2_141 = arith.constant 2 : index
    %c32_142 = arith.constant 32 : index
    %c0_143 = arith.constant 0 : index
    %221 = vector.load %arg8[%c2_141, %c32_142, %c0_143] : memref<4x64x32xf32, #tpu.memory_space<vmem>>, vector<1x8x32xf32>
    %222 = vector.shape_cast %221 : vector<1x8x32xf32> to vector<8x32xf32>
    %cst_144 = arith.constant dense<0.000000e+00> : vector<8x32xf32>
    %223 = tpu.matmul %201, %46, %cst_144 {dimension_numbers = #tpu.dot_dimension_numbers<[1], [0], [0], [1], [0, 0, 1, 1], [], []>} : vector<8x32xf32>, vector<32x32xf32>, vector<8x32xf32> -> vector<8x32xf32>
    %224 = arith.addf %222, %223 : vector<8x32xf32>
    %225 = math.tanh %224 : vector<8x32xf32>
    %c3_145 = arith.constant 3 : index
    %c32_146 = arith.constant 32 : index
    %c0_147 = arith.constant 0 : index
    %226 = vector.load %arg8[%c3_145, %c32_146, %c0_147] : memref<4x64x32xf32, #tpu.memory_space<vmem>>, vector<1x8x32xf32>
    %227 = vector.shape_cast %226 : vector<1x8x32xf32> to vector<8x32xf32>
    %cst_148 = arith.constant dense<0.000000e+00> : vector<8x32xf32>
    %228 = tpu.matmul %201, %48, %cst_148 {dimension_numbers = #tpu.dot_dimension_numbers<[1], [0], [0], [1], [0, 0, 1, 1], [], []>} : vector<8x32xf32>, vector<32x32xf32>, vector<8x32xf32> -> vector<8x32xf32>
    %229 = arith.addf %227, %228 : vector<8x32xf32>
    %230 = arith.negf %229 : vector<8x32xf32>
    %231 = math.exp %230 : vector<8x32xf32>
    %cst_149 = arith.constant 1.000000e+00 : f32
    %232 = vector.broadcast %cst_149 : f32 to vector<8x32xf32>
    %233 = arith.addf %232, %231 : vector<8x32xf32>
    %234 = arith.divf %232, %233 : vector<8x32xf32>
    %235 = arith.mulf %220, %199 : vector<8x32xf32>
    %236 = arith.mulf %211, %225 : vector<8x32xf32>
    %237 = arith.addf %235, %236 : vector<8x32xf32>
    %238 = math.tanh %237 : vector<8x32xf32>
    %239 = arith.mulf %234, %238 : vector<8x32xf32>
    %c32_150 = arith.constant 32 : index
    %c0_151 = arith.constant 0 : index
    %240 = vector.load %arg9[%c32_150, %c0_151] : memref<64x32xf32, #tpu.memory_space<vmem>>, vector<8x32xf32>
    tpu.vector_store %arg9[%c32_150, %c0_151], %239 {strides = array<i32>} : memref<64x32xf32, #tpu.memory_space<vmem>>, vector<8x32xf32>,
    %c0_152 = arith.constant 0 : index
    %c40 = arith.constant 40 : index
    %c0_153 = arith.constant 0 : index
    %241 = vector.load %arg8[%c0_152, %c40, %c0_153] : memref<4x64x32xf32, #tpu.memory_space<vmem>>, vector<1x8x32xf32>
    %242 = vector.shape_cast %241 : vector<1x8x32xf32> to vector<8x32xf32>
    %cst_154 = arith.constant dense<0.000000e+00> : vector<8x32xf32>
    %243 = tpu.matmul %239, %42, %cst_154 {dimension_numbers = #tpu.dot_dimension_numbers<[1], [0], [0], [1], [0, 0, 1, 1], [], []>} : vector<8x32xf32>, vector<32x32xf32>, vector<8x32xf32> -> vector<8x32xf32>
    %244 = arith.addf %242, %243 : vector<8x32xf32>
    %245 = arith.negf %244 : vector<8x32xf32>
    %246 = math.exp %245 : vector<8x32xf32>
    %cst_155 = arith.constant 1.000000e+00 : f32
    %247 = vector.broadcast %cst_155 : f32 to vector<8x32xf32>
    %248 = arith.addf %247, %246 : vector<8x32xf32>
    %249 = arith.divf %247, %248 : vector<8x32xf32>
    %c1_156 = arith.constant 1 : index
    %c40_157 = arith.constant 40 : index
    %c0_158 = arith.constant 0 : index
    %250 = vector.load %arg8[%c1_156, %c40_157, %c0_158] : memref<4x64x32xf32, #tpu.memory_space<vmem>>, vector<1x8x32xf32>
    %251 = vector.shape_cast %250 : vector<1x8x32xf32> to vector<8x32xf32>
    %cst_159 = arith.constant dense<0.000000e+00> : vector<8x32xf32>
    %252 = tpu.matmul %239, %44, %cst_159 {dimension_numbers = #tpu.dot_dimension_numbers<[1], [0], [0], [1], [0, 0, 1, 1], [], []>} : vector<8x32xf32>, vector<32x32xf32>, vector<8x32xf32> -> vector<8x32xf32>
    %253 = arith.addf %251, %252 : vector<8x32xf32>
    %254 = arith.negf %253 : vector<8x32xf32>
    %255 = math.exp %254 : vector<8x32xf32>
    %cst_160 = arith.constant 1.000000e+00 : f32
    %256 = vector.broadcast %cst_160 : f32 to vector<8x32xf32>
    %257 = arith.addf %256, %255 : vector<8x32xf32>
    %258 = arith.divf %256, %257 : vector<8x32xf32>
    %c2_161 = arith.constant 2 : index
    %c40_162 = arith.constant 40 : index
    %c0_163 = arith.constant 0 : index
    %259 = vector.load %arg8[%c2_161, %c40_162, %c0_163] : memref<4x64x32xf32, #tpu.memory_space<vmem>>, vector<1x8x32xf32>
    %260 = vector.shape_cast %259 : vector<1x8x32xf32> to vector<8x32xf32>
    %cst_164 = arith.constant dense<0.000000e+00> : vector<8x32xf32>
    %261 = tpu.matmul %239, %46, %cst_164 {dimension_numbers = #tpu.dot_dimension_numbers<[1], [0], [0], [1], [0, 0, 1, 1], [], []>} : vector<8x32xf32>, vector<32x32xf32>, vector<8x32xf32> -> vector<8x32xf32>
    %262 = arith.addf %260, %261 : vector<8x32xf32>
    %263 = math.tanh %262 : vector<8x32xf32>
    %c3_165 = arith.constant 3 : index
    %c40_166 = arith.constant 40 : index
    %c0_167 = arith.constant 0 : index
    %264 = vector.load %arg8[%c3_165, %c40_166, %c0_167] : memref<4x64x32xf32, #tpu.memory_space<vmem>>, vector<1x8x32xf32>
    %265 = vector.shape_cast %264 : vector<1x8x32xf32> to vector<8x32xf32>
    %cst_168 = arith.constant dense<0.000000e+00> : vector<8x32xf32>
    %266 = tpu.matmul %239, %48, %cst_168 {dimension_numbers = #tpu.dot_dimension_numbers<[1], [0], [0], [1], [0, 0, 1, 1], [], []>} : vector<8x32xf32>, vector<32x32xf32>, vector<8x32xf32> -> vector<8x32xf32>
    %267 = arith.addf %265, %266 : vector<8x32xf32>
    %268 = arith.negf %267 : vector<8x32xf32>
    %269 = math.exp %268 : vector<8x32xf32>
    %cst_169 = arith.constant 1.000000e+00 : f32
    %270 = vector.broadcast %cst_169 : f32 to vector<8x32xf32>
    %271 = arith.addf %270, %269 : vector<8x32xf32>
    %272 = arith.divf %270, %271 : vector<8x32xf32>
    %273 = arith.mulf %258, %237 : vector<8x32xf32>
    %274 = arith.mulf %249, %263 : vector<8x32xf32>
    %275 = arith.addf %273, %274 : vector<8x32xf32>
    %276 = math.tanh %275 : vector<8x32xf32>
    %277 = arith.mulf %272, %276 : vector<8x32xf32>
    %c40_170 = arith.constant 40 : index
    %c0_171 = arith.constant 0 : index
    %278 = vector.load %arg9[%c40_170, %c0_171] : memref<64x32xf32, #tpu.memory_space<vmem>>, vector<8x32xf32>
    tpu.vector_store %arg9[%c40_170, %c0_171], %277 {strides = array<i32>} : memref<64x32xf32, #tpu.memory_space<vmem>>, vector<8x32xf32>,
    %c0_172 = arith.constant 0 : index
    %c48 = arith.constant 48 : index
    %c0_173 = arith.constant 0 : index
    %279 = vector.load %arg8[%c0_172, %c48, %c0_173] : memref<4x64x32xf32, #tpu.memory_space<vmem>>, vector<1x8x32xf32>
    %280 = vector.shape_cast %279 : vector<1x8x32xf32> to vector<8x32xf32>
    %cst_174 = arith.constant dense<0.000000e+00> : vector<8x32xf32>
    %281 = tpu.matmul %277, %42, %cst_174 {dimension_numbers = #tpu.dot_dimension_numbers<[1], [0], [0], [1], [0, 0, 1, 1], [], []>} : vector<8x32xf32>, vector<32x32xf32>, vector<8x32xf32> -> vector<8x32xf32>
    %282 = arith.addf %280, %281 : vector<8x32xf32>
    %283 = arith.negf %282 : vector<8x32xf32>
    %284 = math.exp %283 : vector<8x32xf32>
    %cst_175 = arith.constant 1.000000e+00 : f32
    %285 = vector.broadcast %cst_175 : f32 to vector<8x32xf32>
    %286 = arith.addf %285, %284 : vector<8x32xf32>
    %287 = arith.divf %285, %286 : vector<8x32xf32>
    %c1_176 = arith.constant 1 : index
    %c48_177 = arith.constant 48 : index
    %c0_178 = arith.constant 0 : index
    %288 = vector.load %arg8[%c1_176, %c48_177, %c0_178] : memref<4x64x32xf32, #tpu.memory_space<vmem>>, vector<1x8x32xf32>
    %289 = vector.shape_cast %288 : vector<1x8x32xf32> to vector<8x32xf32>
    %cst_179 = arith.constant dense<0.000000e+00> : vector<8x32xf32>
    %290 = tpu.matmul %277, %44, %cst_179 {dimension_numbers = #tpu.dot_dimension_numbers<[1], [0], [0], [1], [0, 0, 1, 1], [], []>} : vector<8x32xf32>, vector<32x32xf32>, vector<8x32xf32> -> vector<8x32xf32>
    %291 = arith.addf %289, %290 : vector<8x32xf32>
    %292 = arith.negf %291 : vector<8x32xf32>
    %293 = math.exp %292 : vector<8x32xf32>
    %cst_180 = arith.constant 1.000000e+00 : f32
    %294 = vector.broadcast %cst_180 : f32 to vector<8x32xf32>
    %295 = arith.addf %294, %293 : vector<8x32xf32>
    %296 = arith.divf %294, %295 : vector<8x32xf32>
    %c2_181 = arith.constant 2 : index
    %c48_182 = arith.constant 48 : index
    %c0_183 = arith.constant 0 : index
    %297 = vector.load %arg8[%c2_181, %c48_182, %c0_183] : memref<4x64x32xf32, #tpu.memory_space<vmem>>, vector<1x8x32xf32>
    %298 = vector.shape_cast %297 : vector<1x8x32xf32> to vector<8x32xf32>
    %cst_184 = arith.constant dense<0.000000e+00> : vector<8x32xf32>
    %299 = tpu.matmul %277, %46, %cst_184 {dimension_numbers = #tpu.dot_dimension_numbers<[1], [0], [0], [1], [0, 0, 1, 1], [], []>} : vector<8x32xf32>, vector<32x32xf32>, vector<8x32xf32> -> vector<8x32xf32>
    %300 = arith.addf %298, %299 : vector<8x32xf32>
    %301 = math.tanh %300 : vector<8x32xf32>
    %c3_185 = arith.constant 3 : index
    %c48_186 = arith.constant 48 : index
    %c0_187 = arith.constant 0 : index
    %302 = vector.load %arg8[%c3_185, %c48_186, %c0_187] : memref<4x64x32xf32, #tpu.memory_space<vmem>>, vector<1x8x32xf32>
    %303 = vector.shape_cast %302 : vector<1x8x32xf32> to vector<8x32xf32>
    %cst_188 = arith.constant dense<0.000000e+00> : vector<8x32xf32>
    %304 = tpu.matmul %277, %48, %cst_188 {dimension_numbers = #tpu.dot_dimension_numbers<[1], [0], [0], [1], [0, 0, 1, 1], [], []>} : vector<8x32xf32>, vector<32x32xf32>, vector<8x32xf32> -> vector<8x32xf32>
    %305 = arith.addf %303, %304 : vector<8x32xf32>
    %306 = arith.negf %305 : vector<8x32xf32>
    %307 = math.exp %306 : vector<8x32xf32>
    %cst_189 = arith.constant 1.000000e+00 : f32
    %308 = vector.broadcast %cst_189 : f32 to vector<8x32xf32>
    %309 = arith.addf %308, %307 : vector<8x32xf32>
    %310 = arith.divf %308, %309 : vector<8x32xf32>
    %311 = arith.mulf %296, %275 : vector<8x32xf32>
    %312 = arith.mulf %287, %301 : vector<8x32xf32>
    %313 = arith.addf %311, %312 : vector<8x32xf32>
    %314 = math.tanh %313 : vector<8x32xf32>
    %315 = arith.mulf %310, %314 : vector<8x32xf32>
    %c48_190 = arith.constant 48 : index
    %c0_191 = arith.constant 0 : index
    %316 = vector.load %arg9[%c48_190, %c0_191] : memref<64x32xf32, #tpu.memory_space<vmem>>, vector<8x32xf32>
    tpu.vector_store %arg9[%c48_190, %c0_191], %315 {strides = array<i32>} : memref<64x32xf32, #tpu.memory_space<vmem>>, vector<8x32xf32>,
    %c0_192 = arith.constant 0 : index
    %c56 = arith.constant 56 : index
    %c0_193 = arith.constant 0 : index
    %317 = vector.load %arg8[%c0_192, %c56, %c0_193] : memref<4x64x32xf32, #tpu.memory_space<vmem>>, vector<1x8x32xf32>
    %318 = vector.shape_cast %317 : vector<1x8x32xf32> to vector<8x32xf32>
    %cst_194 = arith.constant dense<0.000000e+00> : vector<8x32xf32>
    %319 = tpu.matmul %315, %42, %cst_194 {dimension_numbers = #tpu.dot_dimension_numbers<[1], [0], [0], [1], [0, 0, 1, 1], [], []>} : vector<8x32xf32>, vector<32x32xf32>, vector<8x32xf32> -> vector<8x32xf32>
    %320 = arith.addf %318, %319 : vector<8x32xf32>
    %321 = arith.negf %320 : vector<8x32xf32>
    %322 = math.exp %321 : vector<8x32xf32>
    %cst_195 = arith.constant 1.000000e+00 : f32
    %323 = vector.broadcast %cst_195 : f32 to vector<8x32xf32>
    %324 = arith.addf %323, %322 : vector<8x32xf32>
    %325 = arith.divf %323, %324 : vector<8x32xf32>
    %c1_196 = arith.constant 1 : index
    %c56_197 = arith.constant 56 : index
    %c0_198 = arith.constant 0 : index
    %326 = vector.load %arg8[%c1_196, %c56_197, %c0_198] : memref<4x64x32xf32, #tpu.memory_space<vmem>>, vector<1x8x32xf32>
    %327 = vector.shape_cast %326 : vector<1x8x32xf32> to vector<8x32xf32>
    %cst_199 = arith.constant dense<0.000000e+00> : vector<8x32xf32>
    %328 = tpu.matmul %315, %44, %cst_199 {dimension_numbers = #tpu.dot_dimension_numbers<[1], [0], [0], [1], [0, 0, 1, 1], [], []>} : vector<8x32xf32>, vector<32x32xf32>, vector<8x32xf32> -> vector<8x32xf32>
    %329 = arith.addf %327, %328 : vector<8x32xf32>
    %330 = arith.negf %329 : vector<8x32xf32>
    %331 = math.exp %330 : vector<8x32xf32>
    %cst_200 = arith.constant 1.000000e+00 : f32
    %332 = vector.broadcast %cst_200 : f32 to vector<8x32xf32>
    %333 = arith.addf %332, %331 : vector<8x32xf32>
    %334 = arith.divf %332, %333 : vector<8x32xf32>
    %c2_201 = arith.constant 2 : index
    %c56_202 = arith.constant 56 : index
    %c0_203 = arith.constant 0 : index
    %335 = vector.load %arg8[%c2_201, %c56_202, %c0_203] : memref<4x64x32xf32, #tpu.memory_space<vmem>>, vector<1x8x32xf32>
    %336 = vector.shape_cast %335 : vector<1x8x32xf32> to vector<8x32xf32>
    %cst_204 = arith.constant dense<0.000000e+00> : vector<8x32xf32>
    %337 = tpu.matmul %315, %46, %cst_204 {dimension_numbers = #tpu.dot_dimension_numbers<[1], [0], [0], [1], [0, 0, 1, 1], [], []>} : vector<8x32xf32>, vector<32x32xf32>, vector<8x32xf32> -> vector<8x32xf32>
    %338 = arith.addf %336, %337 : vector<8x32xf32>
    %339 = math.tanh %338 : vector<8x32xf32>
    %c3_205 = arith.constant 3 : index
    %c56_206 = arith.constant 56 : index
    %c0_207 = arith.constant 0 : index
    %340 = vector.load %arg8[%c3_205, %c56_206, %c0_207] : memref<4x64x32xf32, #tpu.memory_space<vmem>>, vector<1x8x32xf32>
    %341 = vector.shape_cast %340 : vector<1x8x32xf32> to vector<8x32xf32>
    %cst_208 = arith.constant dense<0.000000e+00> : vector<8x32xf32>
    %342 = tpu.matmul %315, %48, %cst_208 {dimension_numbers = #tpu.dot_dimension_numbers<[1], [0], [0], [1], [0, 0, 1, 1], [], []>} : vector<8x32xf32>, vector<32x32xf32>, vector<8x32xf32> -> vector<8x32xf32>
    %343 = arith.addf %341, %342 : vector<8x32xf32>
    %344 = arith.negf %343 : vector<8x32xf32>
    %345 = math.exp %344 : vector<8x32xf32>
    %cst_209 = arith.constant 1.000000e+00 : f32
    %346 = vector.broadcast %cst_209 : f32 to vector<8x32xf32>
    %347 = arith.addf %346, %345 : vector<8x32xf32>
    %348 = arith.divf %346, %347 : vector<8x32xf32>
    %349 = arith.mulf %334, %313 : vector<8x32xf32>
    %350 = arith.mulf %325, %339 : vector<8x32xf32>
    %351 = arith.addf %349, %350 : vector<8x32xf32>
    %352 = math.tanh %351 : vector<8x32xf32>
    %353 = arith.mulf %348, %352 : vector<8x32xf32>
    %c56_210 = arith.constant 56 : index
    %c0_211 = arith.constant 0 : index
    %354 = vector.load %arg9[%c56_210, %c0_211] : memref<64x32xf32, #tpu.memory_space<vmem>>, vector<8x32xf32>
    tpu.vector_store %arg9[%c56_210, %c0_211], %353 {strides = array<i32>} : memref<64x32xf32, #tpu.memory_space<vmem>>, vector<8x32xf32>,
    %c0_212 = arith.constant 0 : index
    %c0_213 = arith.constant 0 : index
    %355 = vector.load %arg9[%c0_212, %c0_213] : memref<64x32xf32, #tpu.memory_space<vmem>>, vector<64x32xf32>
    %c0_214 = arith.constant 0 : index
    %c0_215 = arith.constant 0 : index
    %356 = vector.load %arg5[%c0_214, %c0_215] : memref<32x128xf32, #tpu.memory_space<vmem>>, vector<32x128xf32>
    %cst_216 = arith.constant dense<0.000000e+00> : vector<64x128xf32>
    %357 = tpu.matmul %355, %356, %cst_216 {dimension_numbers = #tpu.dot_dimension_numbers<[1], [0], [0], [1], [0, 0, 1, 1], [], []>} : vector<64x32xf32>, vector<32x128xf32>, vector<64x128xf32> -> vector<64x128xf32>
    %c0_217 = arith.constant 0 : index
    %c0_218 = arith.constant 0 : index
    %358 = vector.load %arg6[%c0_217, %c0_218] : memref<1x128xf32, #tpu.memory_space<vmem>>, vector<1x128xf32>
    %359 = vector.broadcast %358 : vector<1x128xf32> to vector<64x128xf32>
    %360 = arith.addf %357, %359 : vector<64x128xf32>
    %c0_219 = arith.constant 0 : index
    %c0_220 = arith.constant 0 : index
    %361 = vector.load %arg7[%c0_219, %c0_220] : memref<64x128xf32, #tpu.memory_space<vmem>>, vector<64x128xf32>
    tpu.vector_store %arg7[%c0_219, %c0_220], %360 {strides = array<i32>} : memref<64x128xf32, #tpu.memory_space<vmem>>, vector<64x128xf32>,
    return
  }
  func.func @transform_0(%arg0: i32) -> (i32, i32) {
    %c0_i32 = arith.constant 0 : i32
    %c0_i32_0 = arith.constant 0 : i32
    %c0_i32_1 = arith.constant 0 : i32
    return %c0_i32, %c0_i32_0 : i32, i32
  }
  func.func @transform_1(%arg0: i32) -> (i32, i32, i32) {
    %c0_i32 = arith.constant 0 : i32
    %c0_i32_0 = arith.constant 0 : i32
    %c0_i32_1 = arith.constant 0 : i32
    %c0_i32_2 = arith.constant 0 : i32
    return %c0_i32, %c0_i32_0, %c0_i32_1 : i32, i32, i32
  }
  func.func @transform_2(%arg0: i32) -> (i32, i32, i32) {
    %c0_i32 = arith.constant 0 : i32
    %c0_i32_0 = arith.constant 0 : i32
    %c0_i32_1 = arith.constant 0 : i32
    %c0_i32_2 = arith.constant 0 : i32
    return %c0_i32, %c0_i32_0, %c0_i32_1 : i32, i32, i32
  }
  func.func @transform_3(%arg0: i32) -> (i32, i32, i32) {
    %c0_i32 = arith.constant 0 : i32
    %c0_i32_0 = arith.constant 0 : i32
    %c0_i32_1 = arith.constant 0 : i32
    %c0_i32_2 = arith.constant 0 : i32
    return %c0_i32, %c0_i32_0, %c0_i32_1 : i32, i32, i32
  }
  func.func @transform_4(%arg0: i32) -> (i32, i32) {
    %c0_i32 = arith.constant 0 : i32
    %c0_i32_0 = arith.constant 0 : i32
    %c0_i32_1 = arith.constant 0 : i32
    return %c0_i32, %c0_i32_0 : i32, i32
  }
  func.func @transform_5(%arg0: i32) -> (i32, i32) {
    %c0_i32 = arith.constant 0 : i32
    %c0_i32_0 = arith.constant 0 : i32
    %c0_i32_1 = arith.constant 0 : i32
    return %c0_i32, %c0_i32_0 : i32, i32
  }
  func.func @transform_6(%arg0: i32) -> (i32, i32) {
    %c0_i32 = arith.constant 0 : i32
    %c0_i32_0 = arith.constant 0 : i32
    %c0_i32_1 = arith.constant 0 : i32
    return %c0_i32, %c0_i32_0 : i32, i32
  }
}

</mosaic_0001>

<bundles_post_ra>
// kernel: tpu_custom_call.1
= control target key start
LH: loop header
LB: loop body
LE: loop exit
PB: predicated region body
PF: predicated region fallthrough
CT: control target
= control target key end

     0   :  { %11 = vsyncpa [#allocation5], 0  ;;  %s2634_s0 = inlined_call_operand.vmem [shape: f32[64,14], index: 0, kind: input, shape index: {}]   ;;  %s2635_s1 = inlined_call_operand.vmem [shape: f32[4,14,32], index: 1, kind: input, shape index: {}]   ;;  %s2636_s2 = inlined_call_operand.vmem [shape: f32[4,1,32], index: 2, kind: input, shape index: {}]   ;;  %s2637_s3 = inlined_call_operand.vmem [shape: f32[4,32,32], index: 3, kind: input, shape index: {}]   ;;  %s2638_s4 = inlined_call_operand.hbm [shape: f32[32,128], index: 4, kind: input, shape index: {}]   ;;  %s2639_s5 = inlined_call_operand.vmem [shape: f32[1,128], index: 5, kind: input, shape index: {}]   ;;  %s2640_s6 = inlined_call_operand.hbm [shape: f32[64,128], index: 6, kind: output, shape index: {}]  }
   0x1   :  { %12 = vsyncpa [#allocation6], 0  ;;  %s25_s23 = sshll.u32 %s2638_s4, 4  ;;  %s2012_s24 = smov [#allocation4]   ;;  %s26_s23 = int_to_ptr.hbm [resolvable:$true] %s25_s23 }
   0x2   :  { %s27_s25 = sshll.u32 %s2012_s24, 4  ;;  %s2013_s26 = smov 128   ;;  %s28_s25 = int_to_ptr.vmem [resolvable:$true] %s27_s25 }
   0x3   :  { %s2014_s27 = smov 8  }
   0x4   :  { %33 = dma.hbm_to_vmem [thread:$0]  %s26_s23, 512, %s28_s25, [#allocation5], %s2013_s26, %s2013_s26, %s2014_s27  }
   0x5   :  { %2008 = dma.done.wait [#allocation5], 512  }
   0x6   :  { %2009 = vsyncadd [#allocation5], 4294966784  ;;  %vm79_vm0 = vcmask 1045504   ;;  %v49_v0 = vld [vmem:[%s2635_s1 + $0x8] sm:$0x3f]  ;;  %v48_v1 = vld [vmem:[%s2635_s1] sm:$0xff] }
   0x7   :  { %1800 = vmatpush.msk.msra.mxu1 %vm79_vm0, %v49_v0  ;;  %1801 = vmatpush.msk.msra.mxu2 %vm79_vm0, %v49_v0  ;;  %v2069_v2 = vld [vmem:[%s2634_s0 + $0x10] sm:$0xff]  ;;  %vm54_vm1 = vcmask 113664   ;;  %v2075_v3 = vld [vmem:[%s2634_s0 + $0x20] sm:$0xff]  ;;  %v1693_v5 = vld [vmem:[%s2635_s1 + $0x18] sm:$0x3f]  ;;  %v2015_v29 = vmov 0.0  }
   0x8   :  { %1802 = vmatpush.msk.msra.mxu3 %vm79_vm0, %v49_v0  ;;  %v2080_v4 = vld [vmem:[%s2634_s0 + $0x30] sm:$0xff]  ;;  %1683 = vmatpush.msk.msra.mxu0 %vm79_vm0, %v49_v0  ;;  %v1717_v6 = vld [vmem:[%s2635_s1 + $0x38] sm:$0x3f]  ;;  %v1705_v7 = vld [vmem:[%s2635_s1 + $0x28] sm:$0x3f]  ;;  %vm124_vm2 = vcmask 261120  }
   0x9   :  { %1803 = vmatpush.msra.mxu1 %v48_v1  ;;  %1804 = vmatpush.msra.mxu2 %v48_v1  ;;  %v1692_v8 = vld [vmem:[%s2635_s1 + $0x10] sm:$0xff]  ;;  %v1704_v10 = vld [vmem:[%s2635_s1 + $0x20] sm:$0xff]  ;;  %v2112_v11 = vld [vmem:[%s2637_s3 + $0x38] sm:$0xff]  ;;  %s1670_s10 = sshll.u32 %s2640_s6, 4  ;;  %s1671_s10 = int_to_ptr.hbm [resolvable:$true] %s1670_s10 }
   0xa   :  { %1805 = vmatpush.msra.mxu3 %v48_v1  ;;  %1686 = vmatmul.msk.f32.vlgmr.msra.gmra.mxu1 %vm54_vm1, %v2069_v2  ;;  %v1716_v9 = vld [vmem:[%s2635_s1 + $0x30] sm:$0xff]  ;;  %v2117_v12 = vld [vmem:[%s2637_s3 + $0x78] sm:$0xff]  ;;  %v2142_v17 = vld [vmem:[%s2634_s0 + $0x28] sm:$0xff] }
   0xb   :  { %1688 = vmatmul.msk.f32.vlgmr.msra.gmra.mxu2 %vm54_vm1, %v2075_v3  ;;  %1690 = vmatmul.msk.f32.vlgmr.msra.gmra.mxu3 %vm54_vm1, %v2080_v4  ;;  %v2122_v13 = vld [vmem:[%s2637_s3 + $0x58] sm:$0xff]  ;;  %v2128_v14 = vld [vmem:[%s2637_s3 + $0x30] sm:$0xff]  ;;  %v40_v19 = vld [vmem:[%s2634_s0] sm:$0xff] }
   0xc   :  { %1695 = vmatpush.msk.msrb.mxu1 %vm79_vm0, %v1693_v5  ;;  %1719 = vmatpush.msk.msrb.mxu3 %vm79_vm0, %v1717_v6  ;;  %v43_v15 = vld [vmem:[%s2634_s0 + $0x18] sm:$0xff]  ;;  %v2137_v16 = vld [vmem:[%s2637_s3 + $0x70] sm:$0xff]  ;;  %v41_v21 = vld [vmem:[%s2634_s0 + $0x8] sm:$0xff] }
   0xd   :  { %1707 = vmatpush.msk.msrb.mxu2 %vm79_vm0, %v1705_v7  ;;  %98 = vmatpush.msra.mxu0 %v48_v1  ;;  %v2147_v18 = vld [vmem:[%s2634_s0 + $0x38] sm:$0xff]  ;;  %v2165_v20 = vld [vmem:[%s2637_s3 + $0x50] sm:$0xff]  ;;  %v2178_v22 = vld [vmem:[%s2637_s3 + $0x28] sm:$0xff] }
   0xe   :  { %159 = vmatpush.msrb.mxu1 %v1692_v8  ;;  %281 = vmatpush.msrb.mxu3 %v1716_v9  ;;  %v2183_v23 = vld [vmem:[%s2637_s3 + $0x68] sm:$0xff]  ;;  %v2188_v24 = vld [vmem:[%s2637_s3 + $0x18] sm:$0xff]  ;;  %v2197_v25 = vld [vmem:[%s2637_s3 + $0x10] sm:$0xff] }
   0xf   :  { %220 = vmatpush.msrb.mxu2 %v1704_v10  ;;  %1684 = vmatmul.msk.f32.vlgmr.msra.gmra.mxu0 %vm54_vm1, %v40_v19  ;;  %v2204_v26 = vld [vmem:[%s2637_s3 + $0x8] sm:$0xff]  ;;  %v2216_v28 = vld [vmem:[%s2637_s3] sm:$0xff] }
  0x10   :  { %392 = vmatpush.msra.mxu1 %v2112_v11  ;;  %456 = vmatpush.msra.mxu3 %v2117_v12  ;;  %v2209_v27 = vld [vmem:[%s2637_s3 + $0x48] sm:$0xff]  ;;  %v2230_v30 = vld [vmem:[%s2637_s3 + $0x20] sm:$0xff] }
  0x11   :  { %433 = vmatpush.msra.mxu2 %v2122_v13  ;;  %351 = vmatpush.msrb.mxu0 %v2188_v24  ;;  %v2235_v31 = vld [vmem:[%s2637_s3 + $0x60] sm:$0xff] }
  0x12   :  { %393 = vmatpush.msra.mxu1 %v2128_v14  ;;  %457 = vmatpush.msra.mxu3 %v2137_v16  ;;  %v2254_v32 = vld [vmem:[%s2637_s3 + $0x40] sm:$0xff] }
  0x13   :  { %1687 = vmatmul.msk.f32.gmra.mxu1 %vm54_vm1, %v43_v15  ;;  %1689 = vmatmul.msk.f32.gmra.mxu2 %vm54_vm1, %v2142_v17  ;;  %v1811_v33 = vld [vmem:[%s2636_s2] ss:$0 sm:$0xff]  ;;  %v2313_v43 = vld [vmem:[%s2636_s2 + $0x1] ss:$0 sm:$0xff]  ;;  %v2323_v51 = vld [vmem:[%s2636_s2 + $0x2] ss:$0 sm:$0xff] }
  0x14   :  { %1691 = vmatmul.msk.f32.gmra.mxu3 %vm54_vm1, %v2147_v18  ;;  %434 = vmatpush.msra.mxu2 %v2165_v20  ;;  %v2328_v52 = vld [vmem:[%s2636_s2 + $0x3] ss:$0 sm:$0xff] }
  0x15   :  { %394 = vmatpush.msra.mxu1 %v2178_v22  ;;  %458 = vmatpush.msra.mxu3 %v2183_v23 }
  0x16   :  { %352 = vmatpush.msrb.mxu0 %v2197_v25  ;;  %435 = vmatpush.msra.mxu2 %v2209_v27 }
  0x17   :  { %1685 = vmatmul.msk.f32.gmra.mxu0 %vm54_vm1, %v41_v21  ;;  %395 = vmatpush.msra.mxu1 %v2230_v30 }
  0x18   :  { %353 = vmatpush.msrb.mxu0 %v2204_v26  ;;  %459 = vmatpush.msra.mxu3 %v2235_v31 }
  0x19   :  { %436 = vmatpush.msra.mxu2 %v2254_v32 }
  0x1a   :  { %354 = vmatpush.msrb.mxu0 %v2216_v28 }
  0x1b   :  { %1696 = vmatmul.msk.f32.vlgmr.msrb.gmra.mxu1 %vm54_vm1, %v40_v19  ;;  %1708 = vmatmul.msk.f32.vlgmr.msrb.gmra.mxu2 %vm54_vm1, %v40_v19 }
  0x1c   :  { %1720 = vmatmul.msk.f32.vlgmr.msrb.gmra.mxu3 %vm54_vm1, %v40_v19  ;;  %506 = vmatpush.msra.mxu0 %v2188_v24 }
  0x1d   :  { %547 = vmatpush.msrb.mxu1 %v2112_v11  ;;  %611 = vmatpush.msrb.mxu3 %v2117_v12 }
  0x1e   :  { %507 = vmatpush.msra.mxu0 %v2197_v25  ;;  %588 = vmatpush.msrb.mxu2 %v2122_v13 }
  0x1f   :  { %355 = vmatmul.f32.vlgmr.msrb.gmra.mxu0 %v2015_v29  ;;  %548 = vmatpush.msrb.mxu1 %v2128_v14 }
  0x20   :  { %612 = vmatpush.msrb.mxu3 %v2137_v16  ;;  %508 = vmatpush.msra.mxu0 %v2204_v26 }
  0x21   :  { %549 = vmatpush.msrb.mxu1 %v2178_v22  ;;  %589 = vmatpush.msrb.mxu2 %v2165_v20 }
  0x22   :  { %613 = vmatpush.msrb.mxu3 %v2183_v23  ;;  %509 = vmatpush.msra.mxu0 %v2216_v28 }
  0x23   :  { %1697 = vmatmul.msk.f32.gmra.mxu1 %vm54_vm1, %v41_v21  ;;  %1709 = vmatmul.msk.f32.gmra.mxu2 %vm54_vm1, %v41_v21 }
  0x24   :  { %1721 = vmatmul.msk.f32.gmra.mxu3 %vm54_vm1, %v41_v21  ;;  %550 = vmatpush.msrb.mxu1 %v2230_v30 }
  0x25   :  { %614 = vmatpush.msrb.mxu3 %v2235_v31  ;;  %661 = vmatpush.msrb.mxu0 %v2188_v24 }
  0x26   :  { %590 = vmatpush.msrb.mxu2 %v2209_v27 }
  0x27   :  { %662 = vmatpush.msrb.mxu0 %v2197_v25 }
  0x28   :  { %591 = vmatpush.msrb.mxu2 %v2254_v32 }
  0x29   :  { %663 = vmatpush.msrb.mxu0 %v2204_v26 }
  0x2b   :  { %1698 = vmatmul.msk.f32.gmra.mxu1 %vm54_vm1, %v2069_v2  ;;  %1710 = vmatmul.msk.f32.gmra.mxu2 %vm54_vm1, %v2069_v2 }
  0x2c   :  { %1722 = vmatmul.msk.f32.gmra.mxu3 %vm54_vm1, %v2069_v2  ;;  %664 = vmatpush.msrb.mxu0 %v2216_v28 }
  0x33   :  { %1699 = vmatmul.msk.f32.gmra.mxu1 %vm54_vm1, %v43_v15  ;;  %1711 = vmatmul.msk.f32.gmra.mxu2 %vm54_vm1, %v43_v15 }
  0x34   :  { %1723 = vmatmul.msk.f32.gmra.mxu3 %vm54_vm1, %v43_v15 }
  0x3b   :  { %1700 = vmatmul.msk.f32.gmra.mxu1 %vm54_vm1, %v2075_v3  ;;  %1712 = vmatmul.msk.f32.gmra.mxu2 %vm54_vm1, %v2075_v3 }
  0x3c   :  { %1724 = vmatmul.msk.f32.gmra.mxu3 %vm54_vm1, %v2075_v3 }
  0x43   :  { %1701 = vmatmul.msk.f32.gmra.mxu1 %vm54_vm1, %v2142_v17  ;;  %1713 = vmatmul.msk.f32.gmra.mxu2 %vm54_vm1, %v2142_v17 }
  0x44   :  { %1725 = vmatmul.msk.f32.gmra.mxu3 %vm54_vm1, %v2142_v17 }
  0x4b   :  { %1702 = vmatmul.msk.f32.gmra.mxu1 %vm54_vm1, %v2080_v4  ;;  %1714 = vmatmul.msk.f32.gmra.mxu2 %vm54_vm1, %v2080_v4 }
  0x4c   :  { %1726 = vmatmul.msk.f32.gmra.mxu3 %vm54_vm1, %v2080_v4 }
  0x53   :  { %1703 = vmatmul.msk.f32.gmra.mxu1 %vm54_vm1, %v2147_v18  ;;  %1715 = vmatmul.msk.f32.gmra.mxu2 %vm54_vm1, %v2147_v18 }
  0x54   :  { %1727 = vmatmul.msk.f32.gmra.mxu3 %vm54_vm1, %v2147_v18 }
  0x5b   :  { %396 = vmatmul.f32.vlgmr.msra.gmra.mxu1 %v2015_v29  ;;  %437 = vmatmul.f32.vlgmr.msra.gmra.mxu2 %v2015_v29 }
  0x5c   :  { %460 = vmatmul.f32.vlgmr.msra.gmra.mxu3 %v2015_v29  ;;  %702 = vmatpush.msra.mxu1 %v2112_v11 }
  0x5d   :  { %743 = vmatpush.msra.mxu2 %v2122_v13  ;;  %766 = vmatpush.msra.mxu3 %v2117_v12 }
  0x5e   :  { %703 = vmatpush.msra.mxu1 %v2128_v14 }
  0x5f   :  { %744 = vmatpush.msra.mxu2 %v2165_v20  ;;  %767 = vmatpush.msra.mxu3 %v2137_v16 }
  0x60   :  { %704 = vmatpush.msra.mxu1 %v2178_v22 }
  0x61   :  { %745 = vmatpush.msra.mxu2 %v2209_v27  ;;  %768 = vmatpush.msra.mxu3 %v2183_v23 }
  0x62   :  { %705 = vmatpush.msra.mxu1 %v2230_v30 }
  0x63   :  { %746 = vmatpush.msra.mxu2 %v2254_v32  ;;  %769 = vmatpush.msra.mxu3 %v2235_v31 }
  0x87   :  { %v106_v34 = vpop.f32.mrf.mxu1 }
  0x88   :  { %v107_v35 = vadd.f32 %v1811_v33, %v106_v34 }
  0x8a   :  { %127 = vst.msk [vmem:[#allocation2 + $0x10] sm:$0xff] %vm124_vm2, %v107_v35 }
  0x8c   :  { %v100_v42 = vpop.f32.mrf.mxu0 }
  0x8d   :  { %v101_v44 = vadd.f32 %v1811_v33, %v100_v42 }
  0x8e   :  { %v112_v36 = vpop.f32.mrf.mxu2  ;;  %v118_v37 = vpop.f32.mrf.mxu3 }
  0x8f   :  { %v113_v38 = vadd.f32 %v1811_v33, %v112_v36  ;;  %v119_v39 = vadd.f32 %v1811_v33, %v118_v37  ;;  %125 = vst.msk [vmem:[#allocation2] sm:$0xff] %vm124_vm2, %v101_v44 }
  0x90   :  { %v109_v40 = vpop.f32.mrf.mxu1 }
  0x91   :  { %v110_v41 = vadd.f32 %v1811_v33, %v109_v40  ;;  %129 = vst.msk [vmem:[#allocation2 + $0x20] sm:$0xff] %vm124_vm2, %v113_v38 }
  0x92   :  { %131 = vst.msk [vmem:[#allocation2 + $0x30] sm:$0xff] %vm124_vm2, %v119_v39 }
  0x93   :  { %128 = vst.msk [vmem:[#allocation2 + $0x18] sm:$0xff] %vm124_vm2, %v110_v41 }
  0x94   :  { %v103_v53 = vpop.f32.mrf.mxu0 }
  0x95   :  { %v104_v54 = vadd.f32 %v1811_v33, %v103_v53 }
  0x96   :  { %v115_v45 = vpop.f32.mrf.mxu2  ;;  %v335_v37 = vld [vmem:[#allocation2] sm:$0xff] }
  0x97   :  { %v121_v46 = vpop.f32.mrf.mxu3  ;;  %v116_v47 = vadd.f32 %v1811_v33, %v115_v45  ;;  %126 = vst.msk [vmem:[#allocation2 + $0x8] sm:$0xff] %vm124_vm2, %v104_v54 }
  0x98   :  { %v122_v48 = vadd.f32 %v1811_v33, %v121_v46  ;;  %v161_v49 = vpop.f32.mrf.mxu1 }
  0x99   :  { %v162_v50 = vadd.f32 %v2313_v43, %v161_v49  ;;  %130 = vst.msk [vmem:[#allocation2 + $0x28] sm:$0xff] %vm124_vm2, %v116_v47 }
  0x9a   :  { %132 = vst.msk [vmem:[#allocation2 + $0x38] sm:$0xff] %vm124_vm2, %v122_v48 }
  0x9b   :  { %186 = vst.msk [vmem:[#allocation2 + $0x40] sm:$0xff] %vm124_vm2, %v162_v50 }
  0x9c   :  { %v356_v38 = vpop.f32.mrf.mxu0 }
  0x9d   :  { %v359_v39 = vadd.f32 %v356_v38, %v335_v37 }
  0x9e   :  { %v222_v55 = vpop.f32.mrf.mxu2 }
  0x9f   :  { %v283_v56 = vpop.f32.mrf.mxu3  ;;  %v223_v57 = vadd.f32 %v2323_v51, %v222_v55  ;;  %v1740_v46 = vmul.f32 -1.442695, %v359_v39 }
  0xa0   :  { %v284_v58 = vadd.f32 %v2328_v52, %v283_v56  ;;  %v164_v59 = vpop.f32.mrf.mxu1 }
  0xa1   :  { %v165_v60 = vadd.f32 %v2313_v43, %v164_v59  ;;  %247 = vst.msk [vmem:[#allocation2 + $0x80] sm:$0xff] %vm124_vm2, %v223_v57  ;;  %1816 = vpow2.f32 %v1740_v46 }
  0xa2   :  { %308 = vst.msk [vmem:[#allocation2 + $0xc0] sm:$0xff] %vm124_vm2, %v284_v58 }
  0xa3   :  { %187 = vst.msk [vmem:[#allocation2 + $0x48] sm:$0xff] %vm124_vm2, %v165_v60 }
  0xa6   :  { %v225_v61 = vpop.f32.mrf.mxu2 }
  0xa7   :  { %v286_v62 = vpop.f32.mrf.mxu3  ;;  %v226_v63 = vadd.f32 %v2323_v51, %v225_v61  ;;  %v1817_v56 = vpop.eup %1816 }
  0xa8   :  { %v287_v0 = vadd.f32 %v2328_v52, %v286_v62  ;;  %v167_v1 = vpop.f32.mrf.mxu1  ;;  %v363_v57 = vadd.f32 1.0, %v1817_v56  ;;  %v379_v62 = vld [vmem:[#allocation2 + $0x40] sm:$0xff] }
  0xa9   :  { %v168_v2 = vadd.f32 %v2313_v43, %v167_v1  ;;  %248 = vst.msk [vmem:[#allocation2 + $0x88] sm:$0xff] %vm124_vm2, %v226_v63  ;;  %v443_v1 = vld [vmem:[#allocation2 + $0xc0] sm:$0xff] }
  0xaa   :  { %309 = vst.msk [vmem:[#allocation2 + $0xc8] sm:$0xff] %vm124_vm2, %v287_v0  ;;  %1818 = vrcp.f32 %v363_v57  ;;  %vm369_vm3 = vweird.f32 %v363_v57 }
  0xab   :  { %188 = vst.msk [vmem:[#allocation2 + $0x50] sm:$0xff] %vm124_vm2, %v168_v2 }
  0xae   :  { %v228_v3 = vpop.f32.mrf.mxu2 }
  0xaf   :  { %v289_v4 = vpop.f32.mrf.mxu3  ;;  %v229_v5 = vadd.f32 %v2323_v51, %v228_v3 }
  0xb0   :  { %v290_v6 = vadd.f32 %v2328_v52, %v289_v4  ;;  %v170_v7 = vpop.f32.mrf.mxu1  ;;  %v1819_v3 = vpop.eup %1818 }
  0xb1   :  { %v171_v8 = vadd.f32 %v2313_v43, %v170_v7  ;;  %249 = vst.msk [vmem:[#allocation2 + $0x90] sm:$0xff] %vm124_vm2, %v229_v5  ;;  %v365_v7 = vmul.f32 %v1819_v3, %v363_v57  ;;  %vm370_vm4 = vweird.f32 %v1819_v3 }
  0xb2   :  { %310 = vst.msk [vmem:[#allocation2 + $0xd0] sm:$0xff] %vm124_vm2, %v290_v6  ;;  %vm2377_vm5 = vmor %vm369_vm3, %vm370_vm4 }
  0xb3   :  { %189 = vst.msk [vmem:[#allocation2 + $0x58] sm:$0xff] %vm124_vm2, %v171_v8 }
  0xb6   :  { %v231_v9 = vpop.f32.mrf.mxu2 }
  0xb7   :  { %v292_v10 = vpop.f32.mrf.mxu3  ;;  %v232_v15 = vadd.f32 %v2323_v51, %v231_v9  ;;  %v420_v9 = vld [vmem:[#allocation2 + $0x80] sm:$0xff] }
  0xb8   :  { %v293_v17 = vadd.f32 %v2328_v52, %v292_v10  ;;  %v173_v18 = vpop.f32.mrf.mxu1 }
  0xb9   :  { %v174_v19 = vadd.f32 %v2313_v43, %v173_v18  ;;  %250 = vst.msk [vmem:[#allocation2 + $0x98] sm:$0xff] %vm124_vm2, %v232_v15 }
  0xba   :  { %311 = vst.msk [vmem:[#allocation2 + $0xd8] sm:$0xff] %vm124_vm2, %v293_v17 }
  0xbb   :  { %190 = vst.msk [vmem:[#allocation2 + $0x60] sm:$0xff] %vm124_vm2, %v174_v19 }
  0xbe   :  { %v234_v21 = vpop.f32.mrf.mxu2 }
  0xbf   :  { %v295_v29 = vpop.f32.mrf.mxu3  ;;  %v235_v33 = vadd.f32 %v2323_v51, %v234_v21 }
  0xc0   :  { %v296_v34 = vadd.f32 %v2328_v52, %v295_v29  ;;  %v176_v35 = vpop.f32.mrf.mxu1  ;;  %v375_v29 = vand.u32 2147483648, %v363_v57 }
  0xc1   :  { %v177_v36 = vadd.f32 %v2313_v43, %v176_v35  ;;  %251 = vst.msk [vmem:[#allocation2 + $0xa0] sm:$0xff] %vm124_vm2, %v235_v33  ;;  %v373_v35 = vand.u32 2147483647, %v363_v57 }
  0xc2   :  { %312 = vst.msk [vmem:[#allocation2 + $0xe0] sm:$0xff] %vm124_vm2, %v296_v34 }
  0xc3   :  { %191 = vst.msk [vmem:[#allocation2 + $0x68] sm:$0xff] %vm124_vm2, %v177_v36  ;;  %vm374_vm8 = vcmp.eq.f32.partialorder %v373_v35, 8.507059e+37 }
  0xc6   :  { %v237_v40 = vpop.f32.mrf.mxu2 }
  0xc7   :  { %v298_v41 = vpop.f32.mrf.mxu3  ;;  %v238_v42 = vadd.f32 %v2323_v51, %v237_v40  ;;  %v376_v40 = vor.u32 1.1754944e-38, %v375_v29 }
  0xc8   :  { %v299_v44 = vadd.f32 %v2328_v52, %v298_v41  ;;  %v179_v45 = vpop.f32.mrf.mxu1 }
  0xc9   :  { %v180_v47 = vadd.f32 %v2313_v43, %v179_v45  ;;  %252 = vst.msk [vmem:[#allocation2 + $0xa8] sm:$0xff] %vm124_vm2, %v238_v42 }
  0xca   :  { %313 = vst.msk [vmem:[#allocation2 + $0xe8] sm:$0xff] %vm124_vm2, %v299_v44 }
  0xcb   :  { %192 = vst.msk [vmem:[#allocation2 + $0x70] sm:$0xff] %vm124_vm2, %v180_v47 }
  0xce   :  { %v240_v48 = vpop.f32.mrf.mxu2 }
  0xcf   :  { %v301_v49 = vpop.f32.mrf.mxu3  ;;  %v241_v50 = vadd.f32 %v2323_v51, %v240_v48 }
  0xd0   :  { %v302_v53 = vadd.f32 %v2328_v52, %v301_v49  ;;  %v182_v54 = vpop.f32.mrf.mxu1 }
  0xd1   :  { %v183_v55 = vadd.f32 %v2313_v43, %v182_v54  ;;  %253 = vst.msk [vmem:[#allocation2 + $0xb0] sm:$0xff] %vm124_vm2, %v241_v50 }
  0xd2   :  { %314 = vst.msk [vmem:[#allocation2 + $0xf0] sm:$0xff] %vm124_vm2, %v302_v53 }
  0xd3   :  { %193 = vst.msk [vmem:[#allocation2 + $0x78] sm:$0xff] %vm124_vm2, %v183_v55 }
  0xd6   :  { %v243_v58 = vpop.f32.mrf.mxu2 }
  0xd7   :  { %v304_v59 = vpop.f32.mrf.mxu3  ;;  %v244_v60 = vadd.f32 %v2323_v51, %v243_v58 }
  0xd8   :  { %v305_v61 = vadd.f32 %v2328_v52, %v304_v59  ;;  %v397_v63 = vpop.f32.mrf.mxu1  ;;  %v366_v52 = vsub.f32 1.0, %v365_v7 }
  0xd9   :  { %v400_v0 = vadd.f32 %v397_v63, %v379_v62  ;;  %254 = vst.msk [vmem:[#allocation2 + $0xb8] sm:$0xff] %vm124_vm2, %v244_v60 }
  0xda   :  { %315 = vst.msk [vmem:[#allocation2 + $0xf8] sm:$0xff] %vm124_vm2, %v305_v61  ;;  %v367_v17 = vmul.f32 %v1819_v3, %v366_v52  ;;  %v598_v52 = vld [vmem:[#allocation2 + $0xc8] sm:$0xff] }
  0xdb   :  { %v1741_v43 = vmul.f32 -1.442695, %v400_v0 }
  0xdc   :  { %v368_v34 = vadd.f32 %v1819_v3, %v367_v17 }
  0xdd   :  { %1820 = vpow2.f32 %v1741_v43 }
  0xde   :  { %v438_v8 = vpop.f32.mrf.mxu2  ;;  %v372_v42 = vsel %vm2377_vm5, %v1819_v3, %v368_v34  ;;  %v534_v3 = vld [vmem:[#allocation2 + $0x48] sm:$0xff] }
  0xdf   :  { %v461_v2 = vpop.f32.mrf.mxu3  ;;  %v441_v15 = vadd.f32 %v438_v8, %v420_v9  ;;  %v377_v49 = vsel %vm374_vm8, %v376_v40, %v372_v42 }
  0xe0   :  { %v464_v4 = vadd.f32 %v461_v2, %v443_v1  ;;  %v490_v1 = vld [vmem:[#allocation2 + $0x8] sm:$0xff] }
  0xe2   :  { %v1742_v5 = vmul.f32 -1.442695, %v464_v4 }
  0xe3   :  { %v1821_v6 = vpop.eup %1820 }
  0xe4   :  { %v404_v51 = vadd.f32 1.0, %v1821_v6  ;;  %1822 = vpow2.f32 %v1742_v5 }
  0xe6   :  { %1824 = vrcp.f32 %v404_v51  ;;  %v416_v36 = vand.u32 2147483648, %v404_v51  ;;  %v414_v39 = vand.u32 2147483647, %v404_v51  ;;  %vm410_vm7 = vweird.f32 %v404_v51 }
  0xe8   :  { %v417_v46 = vor.u32 1.1754944e-38, %v416_v36  ;;  %vm415_vm10 = vcmp.eq.f32.partialorder %v414_v39, 8.507059e+37 }
  0xea   :  { %v1823_v10 = vpop.eup %1822 }
  0xeb   :  { %v468_v18 = vadd.f32 1.0, %v1823_v10 }
  0xec   :  { %v1825_v19 = vpop.eup %1824 }
  0xed   :  { %v406_v21 = vmul.f32 %v1825_v19, %v404_v51  ;;  %1826 = vrcp.f32 %v468_v18  ;;  %vm411_vm6 = vweird.f32 %v1825_v19  ;;  %v480_v59 = vand.u32 2147483648, %v468_v18 }
  0xee   :  { %1828 = vtanh.f32 %v441_v15  ;;  %vm412_vm9 = vmor %vm410_vm7, %vm411_vm6  ;;  %vm474_vm12 = vweird.f32 %v468_v18  ;;  %v478_v60 = vand.u32 2147483647, %v468_v18 }
  0xef   :  { %v407_v33 = vsub.f32 1.0, %v406_v21  ;;  %v481_v62 = vor.u32 1.1754944e-38, %v480_v59 }
  0xf0   :  { %vm479_vm14 = vcmp.eq.f32.partialorder %v478_v60, 8.507059e+37 }
  0xf1   :  { %v408_v38 = vmul.f32 %v1825_v19, %v407_v33  ;;  %v575_v33 = vld [vmem:[#allocation2 + $0x88] sm:$0xff] }
  0xf3   :  { %v1827_v41 = vpop.eup %1826  ;;  %v409_v44 = vadd.f32 %v1825_v19, %v408_v38 }
  0xf4   :  { %v1829_v45 = vpop.eup %1828  ;;  %v470_v47 = vmul.f32 %v1827_v41, %v468_v18  ;;  %vm475_vm11 = vweird.f32 %v1827_v41 }
  0xf5   :  { %v413_v48 = vsel %vm412_vm9, %v1825_v19, %v409_v44  ;;  %v485_v55 = vmul.f32 %v1829_v45, %v377_v49  ;;  %vm476_vm13 = vmor %vm474_vm12, %vm475_vm11 }
  0xf6   :  { %v418_v50 = vsel %vm415_vm10, %v417_v46, %v413_v48  ;;  %v471_v53 = vsub.f32 1.0, %v470_v47 }
  0xf7   :  { %v484_v54 = vmul.f32 0.0, %v418_v50 }
  0xf8   :  { %v472_v56 = vmul.f32 %v1827_v41, %v471_v53 }
  0xf9   :  { %v2383_v57 = vadd.f32 %v485_v55, %v484_v54 }
  0xfa   :  { %v473_v58 = vadd.f32 %v1827_v41, %v472_v56 }
  0xfb   :  { %1830 = vtanh.f32 %v2383_v57 }
  0xfc   :  { %v477_v61 = vsel %vm476_vm13, %v1827_v41, %v473_v58 }
  0xfd   :  { %v482_v0 = vsel %vm479_vm14, %v481_v62, %v477_v61 }
 0x101   :  { %v1831_v63 = vpop.eup %1830 }
 0x102   :  { %v488_v43 = vmul.f32 %v1831_v63, %v482_v0 }
 0x104   :  { %489 = vst.msk [vmem:[#allocation3] sm:$0xff] %vm124_vm2, %v488_v43  ;;  %1743 = vmatmul.msk.f32.vlgmr.msra.gmra.mxu0 %vm124_vm2, %v488_v43  ;;  %1745 = vmatmul.msk.f32.vlgmr.msrb.gmra.mxu1 %vm124_vm2, %v488_v43 }
 0x105   :  { %1747 = vmatmul.msk.f32.vlgmr.msrb.gmra.mxu2 %vm124_vm2, %v488_v43  ;;  %1748 = vmatmul.msk.f32.vlgmr.msrb.gmra.mxu3 %vm124_vm2, %v488_v43 }
 0x106   :  { %816 = vmatpush.msra.mxu0 %v2188_v24  ;;  %857 = vmatpush.msrb.mxu1 %v2112_v11 }
 0x107   :  { %898 = vmatpush.msrb.mxu2 %v2122_v13  ;;  %921 = vmatpush.msrb.mxu3 %v2117_v12 }
 0x108   :  { %817 = vmatpush.msra.mxu0 %v2197_v25  ;;  %858 = vmatpush.msrb.mxu1 %v2128_v14 }
 0x109   :  { %899 = vmatpush.msrb.mxu2 %v2165_v20  ;;  %922 = vmatpush.msrb.mxu3 %v2137_v16 }
 0x10a   :  { %818 = vmatpush.msra.mxu0 %v2204_v26  ;;  %859 = vmatpush.msrb.mxu1 %v2178_v22 }
 0x10b   :  { %900 = vmatpush.msrb.mxu2 %v2209_v27  ;;  %923 = vmatpush.msrb.mxu3 %v2183_v23 }
 0x10c   :  { %819 = vmatpush.msra.mxu0 %v2216_v28  ;;  %860 = vmatpush.msrb.mxu1 %v2230_v30 }
 0x10d   :  { %901 = vmatpush.msrb.mxu2 %v2254_v32  ;;  %924 = vmatpush.msrb.mxu3 %v2235_v31 }
 0x181   :  { %v511_v2 = vpop.f32.mrf.mxu0  ;;  %v552_v4 = vpop.f32.mrf.mxu1 }
 0x182   :  { %v514_v5 = vadd.f32 %v511_v2, %v490_v1  ;;  %v555_v6 = vadd.f32 %v552_v4, %v534_v3 }
 0x184   :  { %v1744_v7 = vmul.f32 -1.442695, %v514_v5  ;;  %v1746_v51 = vmul.f32 -1.442695, %v555_v6 }
 0x186   :  { %1832 = vpow2.f32 %v1744_v7 }
 0x187   :  { %1834 = vpow2.f32 %v1746_v51 }
 0x188   :  { %v616_v8 = vpop.f32.mrf.mxu3  ;;  %v593_v21 = vpop.f32.mrf.mxu2 }
 0x189   :  { %v619_v9 = vadd.f32 %v616_v8, %v598_v52  ;;  %v596_v36 = vadd.f32 %v593_v21, %v575_v33 }
 0x18b   :  { %v1749_v10 = vmul.f32 -1.442695, %v619_v9 }
 0x18c   :  { %v1833_v15 = vpop.eup %1832 }
 0x18d   :  { %v1835_v17 = vpop.eup %1834  ;;  %v518_v18 = vadd.f32 1.0, %v1833_v15  ;;  %1836 = vpow2.f32 %v1749_v10  ;;  %v689_v10 = vld [vmem:[#allocation2 + $0x50] sm:$0xff] }
 0x18e   :  { %v559_v19 = vadd.f32 1.0, %v1835_v17 }
 0x18f   :  { %1838 = vrcp.f32 %v518_v18  ;;  %v530_v42 = vand.u32 2147483648, %v518_v18  ;;  %v528_v46 = vand.u32 2147483647, %v518_v18  ;;  %vm524_vm1 = vweird.f32 %v518_v18 }
 0x190   :  { %1840 = vrcp.f32 %v559_v19  ;;  %v571_v44 = vand.u32 2147483648, %v559_v19  ;;  %v569_v48 = vand.u32 2147483647, %v559_v19  ;;  %vm565_vm3 = vweird.f32 %v559_v19 }
 0x191   :  { %v531_v53 = vor.u32 1.1754944e-38, %v530_v42  ;;  %vm529_vm6 = vcmp.eq.f32.partialorder %v528_v46, 8.507059e+37  ;;  %v730_v42 = vld [vmem:[#allocation2 + $0x90] sm:$0xff] }
 0x192   :  { %v572_v56 = vor.u32 1.1754944e-38, %v571_v44  ;;  %vm570_vm7 = vcmp.eq.f32.partialorder %v569_v48, 8.507059e+37 }
 0x193   :  { %v1837_v29 = vpop.eup %1836 }
 0x194   :  { %v623_v34 = vadd.f32 1.0, %v1837_v29  ;;  %v753_v29 = vld [vmem:[#allocation2 + $0xd0] sm:$0xff] }
 0x195   :  { %v1839_v35 = vpop.eup %1838 }
 0x196   :  { %v1841_v37 = vpop.eup %1840  ;;  %v520_v38 = vmul.f32 %v1839_v35, %v518_v18  ;;  %1842 = vrcp.f32 %v623_v34  ;;  %vm525_vm15 = vweird.f32 %v1839_v35  ;;  %v635_v4 = vand.u32 2147483648, %v623_v34 }
 0x197   :  { %v561_v39 = vmul.f32 %v1841_v37, %v559_v19  ;;  %1844 = vtanh.f32 %v596_v36  ;;  %vm566_vm0 = vweird.f32 %v1841_v37  ;;  %vm526_vm4 = vmor %vm524_vm1, %vm525_vm15  ;;  %vm629_vm9 = vweird.f32 %v623_v34 }
 0x198   :  { %v521_v40 = vsub.f32 1.0, %v520_v38  ;;  %vm567_vm5 = vmor %vm565_vm3, %vm566_vm0  ;;  %v633_v5 = vand.u32 2147483647, %v623_v34  ;;  %v636_v7 = vor.u32 1.1754944e-38, %v635_v4 }
 0x199   :  { %v562_v41 = vsub.f32 1.0, %v561_v39 }
 0x19a   :  { %v522_v45 = vmul.f32 %v1839_v35, %v521_v40  ;;  %vm634_vm11 = vcmp.eq.f32.partialorder %v633_v5, 8.507059e+37 }
 0x19b   :  { %v563_v47 = vmul.f32 %v1841_v37, %v562_v41 }
 0x19c   :  { %v1843_v49 = vpop.eup %1842  ;;  %v523_v50 = vadd.f32 %v1839_v35, %v522_v45 }
 0x19d   :  { %v564_v54 = vadd.f32 %v1841_v37, %v563_v47  ;;  %v625_v55 = vmul.f32 %v1843_v49, %v623_v34  ;;  %v1845_v59 = vpop.eup %1844  ;;  %vm630_vm8 = vweird.f32 %v1843_v49 }
 0x19e   :  { %v527_v58 = vsel %vm526_vm4, %v1839_v35, %v523_v50  ;;  %vm631_vm10 = vmor %vm629_vm9, %vm630_vm8 }
 0x19f   :  { %v532_v60 = vsel %vm529_vm6, %v531_v53, %v527_v58  ;;  %v568_v61 = vsel %vm567_vm5, %v1841_v37, %v564_v54  ;;  %v626_v62 = vsub.f32 1.0, %v625_v55 }
 0x1a0   :  { %v573_v63 = vsel %vm570_vm7, %v572_v56, %v568_v61  ;;  %v640_v0 = vmul.f32 %v1845_v59, %v532_v60 }
 0x1a1   :  { %v639_v43 = vmul.f32 %v573_v63, %v2383_v57  ;;  %v627_v1 = vmul.f32 %v1843_v49, %v626_v62  ;;  %v645_v57 = vld [vmem:[#allocation2 + $0x10] sm:$0xff] }
 0x1a3   :  { %v2408_v2 = vadd.f32 %v640_v0, %v639_v43  ;;  %v628_v3 = vadd.f32 %v1843_v49, %v627_v1 }
 0x1a5   :  { %1846 = vtanh.f32 %v2408_v2  ;;  %v632_v6 = vsel %vm631_vm10, %v1843_v49, %v628_v3 }
 0x1a6   :  { %v637_v52 = vsel %vm634_vm11, %v636_v7, %v632_v6 }
 0x1ab   :  { %v1847_v51 = vpop.eup %1846 }
 0x1ac   :  { %v643_v8 = vmul.f32 %v1847_v51, %v637_v52 }
 0x1ae   :  { %644 = vst.msk [vmem:[#allocation3 + $0x8] sm:$0xff] %vm124_vm2, %v643_v8  ;;  %1750 = vmatmul.msk.f32.vlgmr.msrb.gmra.mxu0 %vm124_vm2, %v643_v8  ;;  %1752 = vmatmul.msk.f32.vlgmr.msra.gmra.mxu1 %vm124_vm2, %v643_v8 }
 0x1af   :  { %1754 = vmatmul.msk.f32.vlgmr.msra.gmra.mxu2 %vm124_vm2, %v643_v8  ;;  %1755 = vmatmul.msk.f32.vlgmr.msra.gmra.mxu3 %vm124_vm2, %v643_v8 }
 0x1b0   :  { %971 = vmatpush.msrb.mxu0 %v2188_v24  ;;  %1012 = vmatpush.msra.mxu1 %v2112_v11 }
 0x1b1   :  { %1053 = vmatpush.msra.mxu2 %v2122_v13  ;;  %1076 = vmatpush.msra.mxu3 %v2117_v12 }
 0x1b2   :  { %972 = vmatpush.msrb.mxu0 %v2197_v25  ;;  %1013 = vmatpush.msra.mxu1 %v2128_v14 }
 0x1b3   :  { %1054 = vmatpush.msra.mxu2 %v2165_v20  ;;  %1077 = vmatpush.msra.mxu3 %v2137_v16 }
 0x1b4   :  { %973 = vmatpush.msrb.mxu0 %v2204_v26  ;;  %1014 = vmatpush.msra.mxu1 %v2178_v22 }
 0x1b5   :  { %1055 = vmatpush.msra.mxu2 %v2209_v27  ;;  %1078 = vmatpush.msra.mxu3 %v2183_v23 }
 0x1b6   :  { %974 = vmatpush.msrb.mxu0 %v2216_v28  ;;  %1015 = vmatpush.msra.mxu1 %v2230_v30 }
 0x1b7   :  { %1056 = vmatpush.msra.mxu2 %v2254_v32  ;;  %1079 = vmatpush.msra.mxu3 %v2235_v31 }
 0x22b   :  { %v666_v9 = vpop.f32.mrf.mxu0  ;;  %v707_v15 = vpop.f32.mrf.mxu1 }
 0x22c   :  { %v669_v17 = vadd.f32 %v666_v9, %v645_v57  ;;  %v710_v18 = vadd.f32 %v707_v15, %v689_v10 }
 0x22e   :  { %v1751_v19 = vmul.f32 -1.442695, %v669_v17  ;;  %v1753_v21 = vmul.f32 -1.442695, %v710_v18 }
 0x230   :  { %1848 = vpow2.f32 %v1751_v19 }
 0x231   :  { %1850 = vpow2.f32 %v1753_v21 }
 0x232   :  { %v771_v33 = vpop.f32.mrf.mxu3  ;;  %v748_v40 = vpop.f32.mrf.mxu2 }
 0x233   :  { %v774_v34 = vadd.f32 %v771_v33, %v753_v29  ;;  %v751_v46 = vadd.f32 %v748_v40, %v730_v42 }
 0x235   :  { %v1756_v35 = vmul.f32 -1.442695, %v774_v34 }
 0x236   :  { %v1849_v36 = vpop.eup %1848 }
 0x237   :  { %v1851_v37 = vpop.eup %1850  ;;  %v673_v38 = vadd.f32 1.0, %v1849_v36  ;;  %1852 = vpow2.f32 %v1756_v35  ;;  %v885_v35 = vld [vmem:[#allocation2 + $0x98] sm:$0xff] }
 0x238   :  { %v714_v39 = vadd.f32 1.0, %v1851_v37 }
 0x239   :  { %1854 = vrcp.f32 %v673_v38  ;;  %v685_v54 = vand.u32 2147483648, %v673_v38  ;;  %v683_v58 = vand.u32 2147483647, %v673_v38  ;;  %vm679_vm14 = vweird.f32 %v673_v38 }
 0x23a   :  { %1856 = vrcp.f32 %v714_v39  ;;  %v726_v55 = vand.u32 2147483648, %v714_v39  ;;  %v724_v60 = vand.u32 2147483647, %v714_v39  ;;  %vm720_vm15 = vweird.f32 %v714_v39 }
 0x23b   :  { %v686_v63 = vor.u32 1.1754944e-38, %v685_v54  ;;  %vm684_vm3 = vcmp.eq.f32.partialorder %v683_v58, 8.507059e+37 }
 0x23c   :  { %v727_v1 = vor.u32 1.1754944e-38, %v726_v55  ;;  %vm725_vm4 = vcmp.eq.f32.partialorder %v724_v60, 8.507059e+37 }
 0x23d   :  { %v1853_v41 = vpop.eup %1852 }
 0x23e   :  { %v778_v44 = vadd.f32 1.0, %v1853_v41 }
 0x23f   :  { %v1855_v45 = vpop.eup %1854 }
 0x240   :  { %v1857_v47 = vpop.eup %1856  ;;  %v675_v48 = vmul.f32 %v1855_v45, %v673_v38  ;;  %1858 = vrcp.f32 %v778_v44  ;;  %vm680_vm12 = vweird.f32 %v1855_v45  ;;  %v790_v15 = vand.u32 2147483648, %v778_v44 }
 0x241   :  { %v716_v49 = vmul.f32 %v1857_v47, %v714_v39  ;;  %1860 = vtanh.f32 %v751_v46  ;;  %vm721_vm13 = vweird.f32 %v1857_v47  ;;  %vm681_vm0 = vmor %vm679_vm14, %vm680_vm12  ;;  %vm784_vm6 = vweird.f32 %v778_v44 }
 0x242   :  { %v676_v50 = vsub.f32 1.0, %v675_v48  ;;  %vm722_vm1 = vmor %vm720_vm15, %vm721_vm13  ;;  %v788_v17 = vand.u32 2147483647, %v778_v44  ;;  %v791_v19 = vor.u32 1.1754944e-38, %v790_v15 }
 0x243   :  { %v717_v53 = vsub.f32 1.0, %v716_v49 }
 0x244   :  { %v677_v56 = vmul.f32 %v1855_v45, %v676_v50  ;;  %vm789_vm8 = vcmp.eq.f32.partialorder %v788_v17, 8.507059e+37  ;;  %v2475_v17 = vld [vmem:[%s2637_s3 + $0x38] sm:$0xff] }
 0x245   :  { %v718_v59 = vmul.f32 %v1857_v47, %v717_v53 }
 0x246   :  { %v1859_v61 = vpop.eup %1858  ;;  %v678_v62 = vadd.f32 %v1855_v45, %v677_v56 }
 0x247   :  { %v719_v0 = vadd.f32 %v1857_v47, %v718_v59  ;;  %v780_v43 = vmul.f32 %v1859_v61, %v778_v44  ;;  %v1861_v4 = vpop.eup %1860  ;;  %vm785_vm5 = vweird.f32 %v1859_v61 }
 0x248   :  { %v682_v3 = vsel %vm681_vm0, %v1855_v45, %v678_v62  ;;  %vm786_vm7 = vmor %vm784_vm6, %vm785_vm5 }
 0x249   :  { %v687_v5 = vsel %vm684_vm3, %v686_v63, %v682_v3  ;;  %v723_v6 = vsel %vm722_vm1, %v1857_v47, %v719_v0  ;;  %v781_v7 = vsub.f32 1.0, %v780_v43 }
 0x24a   :  { %v728_v51 = vsel %vm725_vm4, %v727_v1, %v723_v6  ;;  %v795_v52 = vmul.f32 %v1861_v4, %v687_v5 }
 0x24b   :  { %v794_v8 = vmul.f32 %v728_v51, %v2408_v2  ;;  %v782_v57 = vmul.f32 %v1859_v61, %v781_v7 }
 0x24d   :  { %v2433_v9 = vadd.f32 %v795_v52, %v794_v8  ;;  %v783_v10 = vadd.f32 %v1859_v61, %v782_v57 }
 0x24f   :  { %1862 = vtanh.f32 %v2433_v9  ;;  %v787_v18 = vsel %vm786_vm7, %v1859_v61, %v783_v10 }
 0x250   :  { %v792_v29 = vsel %vm789_vm8, %v791_v19, %v787_v18  ;;  %v2481_v18 = vld [vmem:[%s2637_s3 + $0x58] sm:$0xff] }
 0x251   :  { %v2487_v19 = vld [vmem:[%s2637_s3 + $0x78] sm:$0xff] }
 0x255   :  { %v1863_v21 = vpop.eup %1862 }
 0x256   :  { %v798_v33 = vmul.f32 %v1863_v21, %v792_v29  ;;  %v2493_v21 = vld [vmem:[%s2637_s3 + $0x10] sm:$0xff] }
 0x257   :  { %v2499_v29 = vld [vmem:[%s2637_s3 + $0x30] sm:$0xff] }
 0x258   :  { %799 = vst.msk [vmem:[#allocation3 + $0x10] sm:$0xff] %vm124_vm2, %v798_v33  ;;  %1757 = vmatmul.msk.f32.vlgmr.msra.gmra.mxu0 %vm124_vm2, %v798_v33  ;;  %1759 = vmatmul.msk.f32.vlgmr.msrb.gmra.mxu1 %vm124_vm2, %v798_v33 }
 0x259   :  { %1761 = vmatmul.msk.f32.vlgmr.msrb.gmra.mxu2 %vm124_vm2, %v798_v33  ;;  %1762 = vmatmul.msk.f32.vlgmr.msrb.gmra.mxu3 %vm124_vm2, %v798_v33  ;;  %v2505_v33 = vld [vmem:[%s2637_s3 + $0x50] sm:$0xff] }
 0x25a   :  { %1126 = vmatpush.msra.mxu0 %v2188_v24  ;;  %1167 = vmatpush.msrb.mxu1 %v2112_v11  ;;  %v800_v11 = vld [vmem:[#allocation2 + $0x18] sm:$0xff] }
 0x25b   :  { %1208 = vmatpush.msrb.mxu2 %v2122_v13  ;;  %1231 = vmatpush.msrb.mxu3 %v2117_v12  ;;  %v844_v13 = vld [vmem:[#allocation2 + $0x58] sm:$0xff] }
 0x25c   :  { %1127 = vmatpush.msra.mxu0 %v2197_v25  ;;  %1168 = vmatpush.msrb.mxu1 %v2128_v14  ;;  %v908_v25 = vld [vmem:[#allocation2 + $0xd8] sm:$0xff] }
 0x25d   :  { %1209 = vmatpush.msrb.mxu2 %v2165_v20  ;;  %1232 = vmatpush.msrb.mxu3 %v2137_v16 }
 0x25e   :  { %1128 = vmatpush.msra.mxu0 %v2204_v26  ;;  %1169 = vmatpush.msrb.mxu1 %v2178_v22 }
 0x25f   :  { %1210 = vmatpush.msrb.mxu2 %v2209_v27  ;;  %1233 = vmatpush.msrb.mxu3 %v2183_v23 }
 0x260   :  { %1129 = vmatpush.msra.mxu0 %v2216_v28  ;;  %1170 = vmatpush.msrb.mxu1 %v2230_v30 }
 0x261   :  { %1211 = vmatpush.msrb.mxu2 %v2254_v32  ;;  %1234 = vmatpush.msrb.mxu3 %v2235_v31 }
 0x2d5   :  { %v821_v12 = vpop.f32.mrf.mxu0  ;;  %v862_v14 = vpop.f32.mrf.mxu1 }
 0x2d6   :  { %v824_v16 = vadd.f32 %v821_v12, %v800_v11  ;;  %v865_v20 = vadd.f32 %v862_v14, %v844_v13  ;;  %v2511_v11 = vld [vmem:[%s2637_s3 + $0x70] sm:$0xff]  ;;  %v2517_v12 = vld [vmem:[%s2637_s3 + $0x8] sm:$0xff] }
 0x2d7   :  { %v2523_v13 = vld [vmem:[%s2637_s3 + $0x28] sm:$0xff] }
 0x2d8   :  { %v1758_v24 = vmul.f32 -1.442695, %v824_v16  ;;  %v1760_v22 = vmul.f32 -1.442695, %v865_v20  ;;  %v2529_v14 = vld [vmem:[%s2637_s3 + $0x48] sm:$0xff]  ;;  %v2541_v20 = vld [vmem:[%s2637_s3] sm:$0xff] }
 0x2d9   :  { %v2535_v16 = vld [vmem:[%s2637_s3 + $0x68] sm:$0xff] }
 0x2da   :  { %1864 = vpow2.f32 %v1758_v24  ;;  %v2547_v24 = vld [vmem:[%s2637_s3 + $0x20] sm:$0xff] }
 0x2db   :  { %1866 = vpow2.f32 %v1760_v22  ;;  %v2553_v22 = vld [vmem:[%s2637_s3 + $0x40] sm:$0xff] }
 0x2dc   :  { %v926_v23 = vpop.f32.mrf.mxu3  ;;  %v903_v31 = vpop.f32.mrf.mxu2 }
 0x2dd   :  { %v929_v26 = vadd.f32 %v926_v23, %v908_v25  ;;  %v906_v38 = vadd.f32 %v903_v31, %v885_v35  ;;  %v2559_v25 = vld [vmem:[%s2637_s3 + $0x60] sm:$0xff] }
 0x2de   :  { %v955_v23 = vld [vmem:[#allocation2 + $0x20] sm:$0xff] }
 0x2df   :  { %v1763_v27 = vmul.f32 -1.442695, %v929_v26 }
 0x2e0   :  { %v1865_v28 = vpop.eup %1864 }
 0x2e1   :  { %v1867_v30 = vpop.eup %1866  ;;  %v828_v2 = vadd.f32 1.0, %v1865_v28  ;;  %1868 = vpow2.f32 %v1763_v27  ;;  %v999_v27 = vld [vmem:[#allocation2 + $0x60] sm:$0xff] }
 0x2e2   :  { %v869_v32 = vadd.f32 1.0, %v1867_v30 }
 0x2e3   :  { %1870 = vrcp.f32 %v828_v2  ;;  %v840_v45 = vand.u32 2147483648, %v828_v2  ;;  %v838_v48 = vand.u32 2147483647, %v828_v2  ;;  %vm834_vm11 = vweird.f32 %v828_v2 }
 0x2e4   :  { %1872 = vrcp.f32 %v869_v32  ;;  %v881_v46 = vand.u32 2147483648, %v869_v32  ;;  %v879_v50 = vand.u32 2147483647, %v869_v32  ;;  %vm875_vm12 = vweird.f32 %v869_v32 }
 0x2e5   :  { %v841_v55 = vor.u32 1.1754944e-38, %v840_v45  ;;  %vm839_vm15 = vcmp.eq.f32.partialorder %v838_v48, 8.507059e+37  ;;  %v1040_v45 = vld [vmem:[#allocation2 + $0xa0] sm:$0xff] }
 0x2e6   :  { %v882_v59 = vor.u32 1.1754944e-38, %v881_v46  ;;  %vm880_vm0 = vcmp.eq.f32.partialorder %v879_v50, 8.507059e+37 }
 0x2e7   :  { %v1869_v34 = vpop.eup %1868 }
 0x2e8   :  { %v933_v36 = vadd.f32 1.0, %v1869_v34  ;;  %v1063_v34 = vld [vmem:[#allocation2 + $0xe0] sm:$0xff] }
 0x2e9   :  { %v1871_v37 = vpop.eup %1870 }
 0x2ea   :  { %v1873_v39 = vpop.eup %1872  ;;  %v830_v40 = vmul.f32 %v1871_v37, %v828_v2  ;;  %1874 = vrcp.f32 %v933_v36  ;;  %vm835_vm9 = vweird.f32 %v1871_v37  ;;  %v945_v7 = vand.u32 2147483648, %v933_v36 }
 0x2eb   :  { %v871_v41 = vmul.f32 %v1873_v39, %v869_v32  ;;  %1876 = vtanh.f32 %v906_v38  ;;  %vm876_vm10 = vweird.f32 %v1873_v39  ;;  %vm836_vm13 = vmor %vm834_vm11, %vm835_vm9  ;;  %vm939_vm3 = vweird.f32 %v933_v36 }
 0x2ec   :  { %v831_v42 = vsub.f32 1.0, %v830_v40  ;;  %vm877_vm14 = vmor %vm875_vm12, %vm876_vm10  ;;  %v943_v51 = vand.u32 2147483647, %v933_v36  ;;  %v946_v8 = vor.u32 1.1754944e-38, %v945_v7 }
 0x2ed   :  { %v872_v44 = vsub.f32 1.0, %v871_v41 }
 0x2ee   :  { %v832_v47 = vmul.f32 %v1871_v37, %v831_v42  ;;  %vm944_vm5 = vcmp.eq.f32.partialorder %v943_v51, 8.507059e+37 }
 0x2ef   :  { %v873_v49 = vmul.f32 %v1873_v39, %v872_v44 }
 0x2f0   :  { %v1875_v53 = vpop.eup %1874  ;;  %v833_v54 = vadd.f32 %v1871_v37, %v832_v47 }
 0x2f1   :  { %v874_v56 = vadd.f32 %v1873_v39, %v873_v49  ;;  %v935_v58 = vmul.f32 %v1875_v53, %v933_v36  ;;  %v1877_v61 = vpop.eup %1876  ;;  %vm940_vm1 = vweird.f32 %v1875_v53 }
 0x2f2   :  { %v837_v60 = vsel %vm836_vm13, %v1871_v37, %v833_v54  ;;  %vm941_vm4 = vmor %vm939_vm3, %vm940_vm1 }
 0x2f3   :  { %v842_v62 = vsel %vm839_vm15, %v841_v55, %v837_v60  ;;  %v878_v63 = vsel %vm877_vm14, %v1873_v39, %v874_v56  ;;  %v936_v0 = vsub.f32 1.0, %v935_v58 }
 0x2f4   :  { %v883_v43 = vsel %vm880_vm0, %v882_v59, %v878_v63  ;;  %v950_v1 = vmul.f32 %v1877_v61, %v842_v62 }
 0x2f5   :  { %v949_v3 = vmul.f32 %v883_v43, %v2433_v9  ;;  %v937_v4 = vmul.f32 %v1875_v53, %v936_v0  ;;  %v2469_v9 = vld [vmem:[%s2637_s3 + $0x18] sm:$0xff] }
 0x2f7   :  { %v2458_v5 = vadd.f32 %v950_v1, %v949_v3  ;;  %v938_v6 = vadd.f32 %v1875_v53, %v937_v4 }
 0x2f9   :  { %1878 = vtanh.f32 %v2458_v5  ;;  %v942_v52 = vsel %vm941_vm4, %v1875_v53, %v938_v6 }
 0x2fa   :  { %v947_v10 = vsel %vm944_vm5, %v946_v8, %v942_v52 }
 0x2ff   :  { %v1879_v57 = vpop.eup %1878 }
 0x300   :  { %v953_v15 = vmul.f32 %v1879_v57, %v947_v10 }
 0x302   :  { %954 = vst.msk [vmem:[#allocation3 + $0x18] sm:$0xff] %vm124_vm2, %v953_v15  ;;  %1764 = vmatmul.msk.f32.vlgmr.msrb.gmra.mxu0 %vm124_vm2, %v953_v15  ;;  %1766 = vmatmul.msk.f32.vlgmr.msra.gmra.mxu1 %vm124_vm2, %v953_v15 }
 0x303   :  { %1768 = vmatmul.msk.f32.vlgmr.msra.gmra.mxu2 %vm124_vm2, %v953_v15  ;;  %1769 = vmatmul.msk.f32.vlgmr.msra.gmra.mxu3 %vm124_vm2, %v953_v15 }
 0x304   :  { %1281 = vmatpush.msrb.mxu0 %v2469_v9  ;;  %1322 = vmatpush.msra.mxu1 %v2475_v17 }
 0x305   :  { %1363 = vmatpush.msra.mxu2 %v2481_v18  ;;  %1386 = vmatpush.msra.mxu3 %v2487_v19 }
 0x306   :  { %1282 = vmatpush.msrb.mxu0 %v2493_v21  ;;  %1323 = vmatpush.msra.mxu1 %v2499_v29 }
 0x307   :  { %1364 = vmatpush.msra.mxu2 %v2505_v33  ;;  %1387 = vmatpush.msra.mxu3 %v2511_v11 }
 0x308   :  { %1283 = vmatpush.msrb.mxu0 %v2517_v12  ;;  %1324 = vmatpush.msra.mxu1 %v2523_v13 }
 0x309   :  { %1365 = vmatpush.msra.mxu2 %v2529_v14  ;;  %1388 = vmatpush.msra.mxu3 %v2535_v16 }
 0x30a   :  { %1284 = vmatpush.msrb.mxu0 %v2541_v20  ;;  %1325 = vmatpush.msra.mxu1 %v2547_v24 }
 0x30b   :  { %1366 = vmatpush.msra.mxu2 %v2553_v22  ;;  %1389 = vmatpush.msra.mxu3 %v2559_v25 }
 0x37f   :  { %v976_v26 = vpop.f32.mrf.mxu0  ;;  %v1017_v28 = vpop.f32.mrf.mxu1 }
 0x380   :  { %v979_v30 = vadd.f32 %v976_v26, %v955_v23  ;;  %v1020_v2 = vadd.f32 %v1017_v28, %v999_v27 }
 0x382   :  { %v1765_v32 = vmul.f32 -1.442695, %v979_v30  ;;  %v1767_v31 = vmul.f32 -1.442695, %v1020_v2 }
 0x384   :  { %1880 = vpow2.f32 %v1765_v32 }
 0x385   :  { %1882 = vpow2.f32 %v1767_v31 }
 0x386   :  { %v1081_v35 = vpop.f32.mrf.mxu3  ;;  %v1058_v42 = vpop.f32.mrf.mxu2 }
 0x387   :  { %v1084_v36 = vadd.f32 %v1081_v35, %v1063_v34  ;;  %v1061_v48 = vadd.f32 %v1058_v42, %v1040_v45 }
 0x389   :  { %v1770_v37 = vmul.f32 -1.442695, %v1084_v36 }
 0x38a   :  { %v1881_v38 = vpop.eup %1880 }
 0x38b   :  { %v1883_v39 = vpop.eup %1882  ;;  %v983_v40 = vadd.f32 1.0, %v1881_v38  ;;  %1884 = vpow2.f32 %v1770_v37  ;;  %v1195_v37 = vld [vmem:[#allocation2 + $0xa8] sm:$0xff] }
 0x38c   :  { %v1024_v41 = vadd.f32 1.0, %v1883_v39 }
 0x38d   :  { %1886 = vrcp.f32 %v983_v40  ;;  %v995_v56 = vand.u32 2147483648, %v983_v40  ;;  %v993_v60 = vand.u32 2147483647, %v983_v40  ;;  %vm989_vm8 = vweird.f32 %v983_v40 }
 0x38e   :  { %1888 = vrcp.f32 %v1024_v41  ;;  %v1036_v58 = vand.u32 2147483648, %v1024_v41  ;;  %v1034_v62 = vand.u32 2147483647, %v1024_v41  ;;  %vm1030_vm9 = vweird.f32 %v1024_v41 }
 0x38f   :  { %v996_v43 = vor.u32 1.1754944e-38, %v995_v56  ;;  %vm994_vm12 = vcmp.eq.f32.partialorder %v993_v60, 8.507059e+37 }
 0x390   :  { %v1037_v4 = vor.u32 1.1754944e-38, %v1036_v58  ;;  %vm1035_vm13 = vcmp.eq.f32.partialorder %v1034_v62, 8.507059e+37 }
 0x391   :  { %v1885_v44 = vpop.eup %1884 }
 0x392   :  { %v1088_v46 = vadd.f32 1.0, %v1885_v44 }
 0x393   :  { %v1887_v47 = vpop.eup %1886 }
 0x394   :  { %v1889_v49 = vpop.eup %1888  ;;  %v985_v50 = vmul.f32 %v1887_v47, %v983_v40  ;;  %1890 = vrcp.f32 %v1088_v46  ;;  %vm990_vm6 = vweird.f32 %v1887_v47  ;;  %v1100_v28 = vand.u32 2147483648, %v1088_v46 }
 0x395   :  { %v1026_v53 = vmul.f32 %v1889_v49, %v1024_v41  ;;  %1892 = vtanh.f32 %v1061_v48  ;;  %vm1031_vm7 = vweird.f32 %v1889_v49  ;;  %vm991_vm10 = vmor %vm989_vm8, %vm990_vm6  ;;  %vm1094_vm15 = vweird.f32 %v1088_v46 }
 0x396   :  { %v986_v54 = vsub.f32 1.0, %v985_v50  ;;  %vm1032_vm11 = vmor %vm1030_vm9, %vm1031_vm7  ;;  %v1098_v30 = vand.u32 2147483647, %v1088_v46  ;;  %v1101_v32 = vor.u32 1.1754944e-38, %v1100_v28 }
 0x397   :  { %v1027_v55 = vsub.f32 1.0, %v1026_v53 }
 0x398   :  { %v987_v59 = vmul.f32 %v1887_v47, %v986_v54  ;;  %vm1099_vm1 = vcmp.eq.f32.partialorder %v1098_v30, 8.507059e+37 }
 0x399   :  { %v1028_v61 = vmul.f32 %v1889_v49, %v1027_v55 }
 0x39a   :  { %v1891_v63 = vpop.eup %1890  ;;  %v988_v0 = vadd.f32 %v1887_v47, %v987_v59 }
 0x39b   :  { %v1029_v1 = vadd.f32 %v1889_v49, %v1028_v61  ;;  %v1090_v3 = vmul.f32 %v1891_v63, %v1088_v46  ;;  %v1893_v7 = vpop.eup %1892  ;;  %vm1095_vm14 = vweird.f32 %v1891_v63 }
 0x39c   :  { %v992_v6 = vsel %vm991_vm10, %v1887_v47, %v988_v0  ;;  %vm1096_vm0 = vmor %vm1094_vm15, %vm1095_vm14 }
 0x39d   :  { %v997_v51 = vsel %vm994_vm12, %v996_v43, %v992_v6  ;;  %v1033_v52 = vsel %vm1032_vm11, %v1889_v49, %v1029_v1  ;;  %v1091_v8 = vsub.f32 1.0, %v1090_v3 }
 0x39e   :  { %v1038_v57 = vsel %vm1035_vm13, %v1037_v4, %v1033_v52  ;;  %v1105_v10 = vmul.f32 %v1893_v7, %v997_v51 }
 0x39f   :  { %v1104_v15 = vmul.f32 %v1038_v57, %v2458_v5  ;;  %v1092_v23 = vmul.f32 %v1891_v63, %v1091_v8  ;;  %v1110_v5 = vld [vmem:[#allocation2 + $0x28] sm:$0xff] }
 0x3a1   :  { %v2563_v26 = vadd.f32 %v1105_v10, %v1104_v15  ;;  %v1093_v27 = vadd.f32 %v1891_v63, %v1092_v23 }
 0x3a3   :  { %1894 = vtanh.f32 %v2563_v26  ;;  %v1097_v2 = vsel %vm1096_vm0, %v1891_v63, %v1093_v27 }
 0x3a4   :  { %v1102_v34 = vsel %vm1099_vm1, %v1101_v32, %v1097_v2  ;;  %v1309_v2 = vld [vmem:[#allocation2 + $0x70] sm:$0xff] }
 0x3a9   :  { %v1895_v31 = vpop.eup %1894 }
 0x3aa   :  { %v1108_v35 = vmul.f32 %v1895_v31, %v1102_v34 }
 0x3ac   :  { %1109 = vst.msk [vmem:[#allocation3 + $0x20] sm:$0xff] %vm124_vm2, %v1108_v35  ;;  %1771 = vmatmul.msk.f32.vlgmr.msra.gmra.mxu0 %vm124_vm2, %v1108_v35  ;;  %1773 = vmatmul.msk.f32.vlgmr.msrb.gmra.mxu1 %vm124_vm2, %v1108_v35 }
 0x3ad   :  { %1775 = vmatmul.msk.f32.vlgmr.msrb.gmra.mxu2 %vm124_vm2, %v1108_v35  ;;  %1776 = vmatmul.msk.f32.vlgmr.msrb.gmra.mxu3 %vm124_vm2, %v1108_v35 }
 0x3ae   :  { %1436 = vmatpush.msra.mxu0 %v2469_v9  ;;  %1477 = vmatpush.msrb.mxu1 %v2475_v17  ;;  %v1154_v17 = vld [vmem:[#allocation2 + $0x68] sm:$0xff] }
 0x3af   :  { %1518 = vmatpush.msrb.mxu2 %v2481_v18  ;;  %1541 = vmatpush.msrb.mxu3 %v2487_v19 }
 0x3b0   :  { %1437 = vmatpush.msra.mxu0 %v2493_v21  ;;  %1478 = vmatpush.msrb.mxu1 %v2499_v29 }
 0x3b1   :  { %1519 = vmatpush.msrb.mxu2 %v2505_v33  ;;  %1542 = vmatpush.msrb.mxu3 %v2511_v11  ;;  %v1218_v11 = vld [vmem:[#allocation2 + $0xe8] sm:$0xff] }
 0x3b2   :  { %1438 = vmatpush.msra.mxu0 %v2517_v12  ;;  %1479 = vmatpush.msrb.mxu1 %v2523_v13 }
 0x3b3   :  { %1520 = vmatpush.msrb.mxu2 %v2529_v14  ;;  %1543 = vmatpush.msrb.mxu3 %v2535_v16 }
 0x3b4   :  { %1439 = vmatpush.msra.mxu0 %v2541_v20  ;;  %1480 = vmatpush.msrb.mxu1 %v2547_v24 }
 0x3b5   :  { %1521 = vmatpush.msrb.mxu2 %v2553_v22  ;;  %1544 = vmatpush.msrb.mxu3 %v2559_v25 }
 0x429   :  { %v1131_v9 = vpop.f32.mrf.mxu0  ;;  %v1172_v18 = vpop.f32.mrf.mxu1 }
 0x42a   :  { %v1134_v19 = vadd.f32 %v1131_v9, %v1110_v5  ;;  %v1175_v21 = vadd.f32 %v1172_v18, %v1154_v17  ;;  %v1373_v9 = vld [vmem:[#allocation2 + $0xf0] sm:$0xff] }
 0x42c   :  { %v1772_v29 = vmul.f32 -1.442695, %v1134_v19  ;;  %v1774_v33 = vmul.f32 -1.442695, %v1175_v21 }
 0x42e   :  { %1896 = vpow2.f32 %v1772_v29 }
 0x42f   :  { %1898 = vpow2.f32 %v1774_v33 }
 0x430   :  { %v1236_v12 = vpop.f32.mrf.mxu3  ;;  %v1213_v25 = vpop.f32.mrf.mxu2 }
 0x431   :  { %v1239_v13 = vadd.f32 %v1236_v12, %v1218_v11  ;;  %v1216_v40 = vadd.f32 %v1213_v25, %v1195_v37  ;;  %v1586_v12 = vld [vmem:[#allocation4 + $0x18] sm:$0xff] }
 0x433   :  { %v1777_v14 = vmul.f32 -1.442695, %v1239_v13  ;;  %v1585_v13 = vld [vmem:[#allocation4 + $0x10] sm:$0xff] }
 0x434   :  { %v1897_v16 = vpop.eup %1896 }
 0x435   :  { %v1899_v20 = vpop.eup %1898  ;;  %v1138_v24 = vadd.f32 1.0, %v1897_v16  ;;  %1900 = vpow2.f32 %v1777_v14  ;;  %v1584_v14 = vld [vmem:[#allocation4 + $0x8] sm:$0xff] }
 0x436   :  { %v1179_v22 = vadd.f32 1.0, %v1899_v20 }
 0x437   :  { %1902 = vrcp.f32 %v1138_v24  ;;  %v1150_v47 = vand.u32 2147483648, %v1138_v24  ;;  %v1148_v50 = vand.u32 2147483647, %v1138_v24  ;;  %vm1144_vm5 = vweird.f32 %v1138_v24 }
 0x438   :  { %1904 = vrcp.f32 %v1179_v22  ;;  %v1191_v48 = vand.u32 2147483648, %v1179_v22  ;;  %v1189_v54 = vand.u32 2147483647, %v1179_v22  ;;  %vm1185_vm6 = vweird.f32 %v1179_v22 }
 0x439   :  { %v1151_v58 = vor.u32 1.1754944e-38, %v1150_v47  ;;  %vm1149_vm9 = vcmp.eq.f32.partialorder %v1148_v50, 8.507059e+37 }
 0x43a   :  { %v1192_v61 = vor.u32 1.1754944e-38, %v1191_v48  ;;  %vm1190_vm10 = vcmp.eq.f32.partialorder %v1189_v54, 8.507059e+37 }
 0x43b   :  { %v1901_v36 = vpop.eup %1900 }
 0x43c   :  { %v1243_v38 = vadd.f32 1.0, %v1901_v36 }
 0x43d   :  { %v1903_v39 = vpop.eup %1902 }
 0x43e   :  { %v1905_v41 = vpop.eup %1904  ;;  %v1140_v42 = vmul.f32 %v1903_v39, %v1138_v24  ;;  %1906 = vrcp.f32 %v1243_v38  ;;  %vm1145_vm3 = vweird.f32 %v1903_v39  ;;  %v1255_v8 = vand.u32 2147483648, %v1243_v38  ;;  %v1583_v24 = vld [vmem:[#allocation4] sm:$0xff] }
 0x43f   :  { %v1181_v44 = vmul.f32 %v1905_v41, %v1179_v22  ;;  %1908 = vtanh.f32 %v1216_v40  ;;  %vm1186_vm4 = vweird.f32 %v1905_v41  ;;  %vm1146_vm7 = vmor %vm1144_vm5, %vm1145_vm3  ;;  %vm1249_vm12 = vweird.f32 %v1243_v38  ;;  %v1350_v22 = vld [vmem:[#allocation2 + $0xb0] sm:$0xff] }
 0x440   :  { %v1141_v45 = vsub.f32 1.0, %v1140_v42  ;;  %vm1187_vm8 = vmor %vm1185_vm6, %vm1186_vm4  ;;  %v1253_v57 = vand.u32 2147483647, %v1243_v38  ;;  %v1256_v15 = vor.u32 1.1754944e-38, %v1255_v8 }
 0x441   :  { %v1182_v46 = vsub.f32 1.0, %v1181_v44 }
 0x442   :  { %v1142_v49 = vmul.f32 %v1903_v39, %v1141_v45  ;;  %vm1254_vm14 = vcmp.eq.f32.partialorder %v1253_v57, 8.507059e+37 }
 0x443   :  { %v1183_v53 = vmul.f32 %v1905_v41, %v1182_v46 }
 0x444   :  { %v1907_v55 = vpop.eup %1906  ;;  %v1143_v56 = vadd.f32 %v1903_v39, %v1142_v49 }
 0x445   :  { %v1184_v59 = vadd.f32 %v1905_v41, %v1183_v53  ;;  %v1245_v60 = vmul.f32 %v1907_v55, %v1243_v38  ;;  %v1909_v63 = vpop.eup %1908  ;;  %vm1250_vm11 = vweird.f32 %v1907_v55 }
 0x446   :  { %v1147_v62 = vsel %vm1146_vm7, %v1903_v39, %v1143_v56  ;;  %vm1251_vm13 = vmor %vm1249_vm12, %vm1250_vm11 }
 0x447   :  { %v1152_v0 = vsel %vm1149_vm9, %v1151_v58, %v1147_v62  ;;  %v1188_v43 = vsel %vm1187_vm8, %v1905_v41, %v1184_v59  ;;  %v1246_v1 = vsub.f32 1.0, %v1245_v60 }
 0x448   :  { %v1193_v3 = vsel %vm1190_vm10, %v1192_v61, %v1188_v43  ;;  %v1260_v4 = vmul.f32 %v1909_v63, %v1152_v0 }
 0x449   :  { %v1259_v6 = vmul.f32 %v1193_v3, %v2563_v26  ;;  %v1247_v7 = vmul.f32 %v1907_v55, %v1246_v1  ;;  %v1265_v26 = vld [vmem:[#allocation2 + $0x30] sm:$0xff] }
 0x44b   :  { %v2588_v51 = vadd.f32 %v1260_v4, %v1259_v6  ;;  %v1248_v52 = vadd.f32 %v1907_v55, %v1247_v7 }
 0x44d   :  { %1910 = vtanh.f32 %v2588_v51  ;;  %v1252_v10 = vsel %vm1251_vm13, %v1907_v55, %v1248_v52 }
 0x44e   :  { %v1257_v27 = vsel %vm1254_vm14, %v1256_v15, %v1252_v10 }
 0x453   :  { %v1911_v23 = vpop.eup %1910 }
 0x454   :  { %v1263_v28 = vmul.f32 %v1911_v23, %v1257_v27  ;;  %v1576_v27 = vld [vmem:[#allocation3 + $0x8] sm:$0xff] }
 0x456   :  { %1264 = vst.msk [vmem:[#allocation3 + $0x28] sm:$0xff] %vm124_vm2, %v1263_v28  ;;  %1778 = vmatmul.msk.f32.vlgmr.msrb.gmra.mxu0 %vm124_vm2, %v1263_v28  ;;  %1780 = vmatmul.msk.f32.vlgmr.msra.gmra.mxu1 %vm124_vm2, %v1263_v28 }
 0x457   :  { %1782 = vmatmul.msk.f32.vlgmr.msra.gmra.mxu2 %vm124_vm2, %v1263_v28  ;;  %1783 = vmatmul.msk.f32.vlgmr.msra.gmra.mxu3 %vm124_vm2, %v1263_v28  ;;  %v1577_v28 = vld [vmem:[#allocation3 + $0x10] sm:$0xff] }
 0x458   :  { %1627 = vmatpush.msrb.mxu0 %v1586_v12 }
 0x45a   :  { %1628 = vmatpush.msrb.mxu0 %v1585_v13 }
 0x45c   :  { %1629 = vmatpush.msrb.mxu0 %v1584_v14 }
 0x45e   :  { %1630 = vmatpush.msrb.mxu0 %v1583_v24 }
 0x4d3   :  { %v1286_v30 = vpop.f32.mrf.mxu0  ;;  %v1327_v32 = vpop.f32.mrf.mxu1 }
 0x4d4   :  { %v1289_v31 = vadd.f32 %v1286_v30, %v1265_v26  ;;  %v1330_v34 = vadd.f32 %v1327_v32, %v1309_v2  ;;  %v1578_v26 = vld [vmem:[#allocation3 + $0x18] sm:$0xff]  ;;  %v1579_v30 = vld [vmem:[#allocation3 + $0x20] sm:$0xff]  ;;  %v1580_v2 = vld [vmem:[#allocation3 + $0x28] sm:$0xff] }
 0x4d6   :  { %v1779_v35 = vmul.f32 -1.442695, %v1289_v31  ;;  %v1781_v5 = vmul.f32 -1.442695, %v1330_v34  ;;  %v1420_v31 = vld [vmem:[#allocation2 + $0x38] sm:$0xff] }
 0x4d8   :  { %1912 = vpow2.f32 %v1779_v35  ;;  %v1464_v35 = vld [vmem:[#allocation2 + $0x78] sm:$0xff] }
 0x4d9   :  { %1914 = vpow2.f32 %v1781_v5 }
 0x4da   :  { %v1391_v17 = vpop.f32.mrf.mxu3  ;;  %v1368_v16 = vpop.f32.mrf.mxu2 }
 0x4db   :  { %v1394_v18 = vadd.f32 %v1391_v17, %v1373_v9  ;;  %v1371_v37 = vadd.f32 %v1368_v16, %v1350_v22 }
 0x4dd   :  { %v1784_v19 = vmul.f32 -1.442695, %v1394_v18 }
 0x4de   :  { %v1913_v21 = vpop.eup %1912 }
 0x4df   :  { %v1915_v29 = vpop.eup %1914  ;;  %v1293_v33 = vadd.f32 1.0, %v1913_v21  ;;  %1916 = vpow2.f32 %v1784_v19  ;;  %v2615_v21 = vld [vmem:[%s2639_s5] ss:$0 sm:$0xff]  ;;  %s2016_s5 = smov [#allocation7]  }
 0x4e0   :  { %v1334_v11 = vadd.f32 1.0, %v1915_v29  ;;  %v1528_v29 = vld [vmem:[#allocation2 + $0xf8] sm:$0xff]  ;;  %s1668_s1 = sshll.u32 %s2016_s5, 4  ;;  %s1669_s1 = int_to_ptr.vmem [resolvable:$true] %s1668_s1 }
 0x4e1   :  { %1918 = vrcp.f32 %v1293_v33  ;;  %v1305_v44 = vand.u32 2147483648, %v1293_v33  ;;  %v1303_v47 = vand.u32 2147483647, %v1293_v33  ;;  %vm1299_vm1 = vweird.f32 %v1293_v33 }
 0x4e2   :  { %1920 = vrcp.f32 %v1334_v11  ;;  %v1346_v45 = vand.u32 2147483648, %v1334_v11  ;;  %v1344_v49 = vand.u32 2147483647, %v1334_v11  ;;  %vm1340_vm3 = vweird.f32 %v1334_v11 }
 0x4e3   :  { %v1306_v54 = vor.u32 1.1754944e-38, %v1305_v44  ;;  %vm1304_vm6 = vcmp.eq.f32.partialorder %v1303_v47, 8.507059e+37 }
 0x4e4   :  { %v1347_v58 = vor.u32 1.1754944e-38, %v1346_v45  ;;  %vm1345_vm7 = vcmp.eq.f32.partialorder %v1344_v49, 8.507059e+37 }
 0x4e5   :  { %v1917_v20 = vpop.eup %1916 }
 0x4e6   :  { %v1398_v25 = vadd.f32 1.0, %v1917_v20 }
 0x4e7   :  { %v1919_v36 = vpop.eup %1918 }
 0x4e8   :  { %v1921_v38 = vpop.eup %1920  ;;  %v1295_v39 = vmul.f32 %v1919_v36, %v1293_v33  ;;  %1922 = vrcp.f32 %v1398_v25  ;;  %vm1300_vm15 = vweird.f32 %v1919_v36  ;;  %v1410_v7 = vand.u32 2147483648, %v1398_v25 }
 0x4e9   :  { %v1336_v40 = vmul.f32 %v1921_v38, %v1334_v11  ;;  %1924 = vtanh.f32 %v1371_v37  ;;  %vm1341_vm0 = vweird.f32 %v1921_v38  ;;  %vm1301_vm4 = vmor %vm1299_vm1, %vm1300_vm15  ;;  %vm1404_vm9 = vweird.f32 %v1398_v25 }
 0x4ea   :  { %v1296_v41 = vsub.f32 1.0, %v1295_v39  ;;  %vm1342_vm5 = vmor %vm1340_vm3, %vm1341_vm0  ;;  %v1408_v52 = vand.u32 2147483647, %v1398_v25  ;;  %v1411_v57 = vor.u32 1.1754944e-38, %v1410_v7  ;;  %v1505_v39 = vld [vmem:[#allocation2 + $0xb8] sm:$0xff] }
 0x4eb   :  { %v1337_v42 = vsub.f32 1.0, %v1336_v40 }
 0x4ec   :  { %v1297_v46 = vmul.f32 %v1919_v36, %v1296_v41  ;;  %vm1409_vm11 = vcmp.eq.f32.partialorder %v1408_v52, 8.507059e+37 }
 0x4ed   :  { %v1338_v48 = vmul.f32 %v1921_v38, %v1337_v42 }
 0x4ee   :  { %v1923_v50 = vpop.eup %1922  ;;  %v1298_v53 = vadd.f32 %v1919_v36, %v1297_v46 }
 0x4ef   :  { %v1339_v55 = vadd.f32 %v1921_v38, %v1338_v48  ;;  %v1400_v56 = vmul.f32 %v1923_v50, %v1398_v25  ;;  %v1925_v60 = vpop.eup %1924  ;;  %vm1405_vm8 = vweird.f32 %v1923_v50 }
 0x4f0   :  { %v1302_v59 = vsel %vm1301_vm4, %v1919_v36, %v1298_v53  ;;  %vm1406_vm10 = vmor %vm1404_vm9, %vm1405_vm8 }
 0x4f1   :  { %v1307_v61 = vsel %vm1304_vm6, %v1306_v54, %v1302_v59  ;;  %v1343_v62 = vsel %vm1342_vm5, %v1921_v38, %v1339_v55  ;;  %v1401_v63 = vsub.f32 1.0, %v1400_v56 }
 0x4f2   :  { %v1348_v0 = vsel %vm1345_vm7, %v1347_v58, %v1343_v62  ;;  %v1415_v43 = vmul.f32 %v1925_v60, %v1307_v61 }
 0x4f3   :  { %v1414_v1 = vmul.f32 %v1348_v0, %v2588_v51  ;;  %v1402_v3 = vmul.f32 %v1923_v50, %v1401_v63  ;;  %v1575_v51 = vld [vmem:[#allocation3] sm:$0xff] }
 0x4f5   :  { %v2597_v4 = vadd.f32 %v1415_v43, %v1414_v1  ;;  %v1403_v6 = vadd.f32 %v1923_v50, %v1402_v3 }
 0x4f7   :  { %1926 = vtanh.f32 %v2597_v4  ;;  %v1407_v8 = vsel %vm1406_vm10, %v1923_v50, %v1403_v6 }
 0x4f8   :  { %v1412_v15 = vsel %vm1409_vm11, %v1411_v57, %v1407_v8 }
 0x4fd   :  { %v1927_v10 = vpop.eup %1926 }
 0x4fe   :  { %v1418_v23 = vmul.f32 %v1927_v10, %v1412_v15 }
 0x500   :  { %1419 = vst.msk [vmem:[#allocation3 + $0x30] sm:$0xff] %vm124_vm2, %v1418_v23  ;;  %1785 = vmatmul.msk.f32.vlgmr.msra.gmra.mxu0 %vm124_vm2, %v1418_v23  ;;  %1787 = vmatmul.msk.f32.vlgmr.msrb.gmra.mxu1 %vm124_vm2, %v1418_v23 }
 0x501   :  { %1789 = vmatmul.msk.f32.vlgmr.msrb.gmra.mxu2 %vm124_vm2, %v1418_v23  ;;  %1790 = vmatmul.msk.f32.vlgmr.msrb.gmra.mxu3 %vm124_vm2, %v1418_v23 }
 0x507   :  { %v1581_v32 = vld [vmem:[#allocation3 + $0x30] sm:$0xff] }
 0x508   :  { %1792 = vmatmul.msk.f32.vlgmr.msrb.gmra.mxu0 %vm124_vm2, %v1575_v51 }
 0x510   :  { %1793 = vmatmul.msk.f32.gmra.mxu0 %vm124_vm2, %v1576_v27 }
 0x518   :  { %1794 = vmatmul.msk.f32.gmra.mxu0 %vm124_vm2, %v1577_v28 }
 0x520   :  { %1795 = vmatmul.msk.f32.gmra.mxu0 %vm124_vm2, %v1578_v26 }
 0x528   :  { %1796 = vmatmul.msk.f32.gmra.mxu0 %vm124_vm2, %v1579_v30 }
 0x530   :  { %1797 = vmatmul.msk.f32.gmra.mxu0 %vm124_vm2, %v1580_v2 }
 0x538   :  { %1798 = vmatmul.msk.f32.gmra.mxu0 %vm124_vm2, %v1581_v32 }
 0x57d   :  { %v1441_v34 = vpop.f32.mrf.mxu0  ;;  %v1482_v5 = vpop.f32.mrf.mxu1 }
 0x57e   :  { %v1444_v9 = vadd.f32 %v1441_v34, %v1420_v31  ;;  %v1485_v17 = vadd.f32 %v1482_v5, %v1464_v35 }
 0x580   :  { %v1786_v18 = vmul.f32 -1.442695, %v1444_v9  ;;  %v1788_v19 = vmul.f32 -1.442695, %v1485_v17 }
 0x582   :  { %1928 = vpow2.f32 %v1786_v18 }
 0x583   :  { %1930 = vpow2.f32 %v1788_v19 }
 0x584   :  { %v1546_v33 = vpop.f32.mrf.mxu3  ;;  %v1523_v36 = vpop.f32.mrf.mxu2 }
 0x585   :  { %v1549_v11 = vadd.f32 %v1546_v33, %v1528_v29  ;;  %v1632_v12 = vpop.f32.mrf.mxu0  ;;  %v1526_v42 = vadd.f32 %v1523_v36, %v1505_v39 }
 0x586   :  { %v1633_v13 = vadd.f32 %v2615_v21, %v1632_v12 }
 0x587   :  { %v1791_v14 = vmul.f32 -1.442695, %v1549_v11 }
 0x588   :  { %v1929_v16 = vpop.eup %1928  ;;  %1656 = vst [vmem:[#allocation7] sm:$0xff] %v1633_v13 }
 0x589   :  { %v1931_v20 = vpop.eup %1930  ;;  %v1448_v24 = vadd.f32 1.0, %v1929_v16  ;;  %1932 = vpow2.f32 %v1791_v14 }
 0x58a   :  { %v1489_v22 = vadd.f32 1.0, %v1931_v20 }
 0x58b   :  { %1934 = vrcp.f32 %v1448_v24  ;;  %v1458_v49 = vand.u32 2147483647, %v1448_v24  ;;  %v1460_v50 = vand.u32 2147483648, %v1448_v24  ;;  %vm1454_vm14 = vweird.f32 %v1448_v24 }
 0x58c   :  { %1936 = vrcp.f32 %v1489_v22  ;;  %v1501_v54 = vand.u32 2147483648, %v1489_v22  ;;  %v1499_v59 = vand.u32 2147483647, %v1489_v22  ;;  %vm1495_vm15 = vweird.f32 %v1489_v22 }
 0x58d   :  { %v1635_v25 = vpop.f32.mrf.mxu0  ;;  %v1461_v62 = vor.u32 1.1754944e-38, %v1460_v50  ;;  %vm1459_vm3 = vcmp.eq.f32.partialorder %v1458_v49, 8.507059e+37 }
 0x58e   :  { %v1636_v37 = vadd.f32 %v2615_v21, %v1635_v25  ;;  %v1502_v43 = vor.u32 1.1754944e-38, %v1501_v54  ;;  %vm1500_vm4 = vcmp.eq.f32.partialorder %v1499_v59, 8.507059e+37 }
 0x58f   :  { %v1933_v38 = vpop.eup %1932 }
 0x590   :  { %v1553_v40 = vadd.f32 1.0, %v1933_v38  ;;  %1657 = vst [vmem:[#allocation7 + $0x8] sm:$0xff] %v1636_v37 }
 0x591   :  { %v1935_v41 = vpop.eup %1934 }
 0x592   :  { %v1937_v44 = vpop.eup %1936  ;;  %v1450_v45 = vmul.f32 %v1935_v41, %v1448_v24  ;;  %1938 = vrcp.f32 %v1553_v40  ;;  %vm1455_vm12 = vweird.f32 %v1935_v41  ;;  %v1565_v26 = vand.u32 2147483648, %v1553_v40 }
 0x593   :  { %v1491_v46 = vmul.f32 %v1937_v44, %v1489_v22  ;;  %1940 = vtanh.f32 %v1526_v42  ;;  %vm1496_vm13 = vweird.f32 %v1937_v44  ;;  %vm1456_vm0 = vmor %vm1454_vm14, %vm1455_vm12  ;;  %vm1559_vm6 = vweird.f32 %v1553_v40 }
 0x594   :  { %v1451_v47 = vsub.f32 1.0, %v1450_v45  ;;  %vm1497_vm1 = vmor %vm1495_vm15, %vm1496_vm13  ;;  %v1563_v30 = vand.u32 2147483647, %v1553_v40  ;;  %v1566_v32 = vor.u32 1.1754944e-38, %v1565_v26 }
 0x595   :  { %v1492_v48 = vsub.f32 1.0, %v1491_v46  ;;  %v1638_v53 = vpop.f32.mrf.mxu0 }
 0x596   :  { %v1452_v55 = vmul.f32 %v1935_v41, %v1451_v47  ;;  %v1639_v56 = vadd.f32 %v2615_v21, %v1638_v53  ;;  %vm1564_vm8 = vcmp.eq.f32.partialorder %v1563_v30, 8.507059e+37 }
 0x597   :  { %v1493_v58 = vmul.f32 %v1937_v44, %v1492_v48 }
 0x598   :  { %v1939_v60 = vpop.eup %1938  ;;  %v1453_v61 = vadd.f32 %v1935_v41, %v1452_v55  ;;  %1658 = vst [vmem:[#allocation7 + $0x10] sm:$0xff] %v1639_v56 }
 0x599   :  { %v1494_v63 = vadd.f32 %v1937_v44, %v1493_v58  ;;  %v1555_v0 = vmul.f32 %v1939_v60, %v1553_v40  ;;  %v1941_v3 = vpop.eup %1940  ;;  %vm1560_vm5 = vweird.f32 %v1939_v60 }
 0x59a   :  { %v1457_v1 = vsel %vm1456_vm0, %v1935_v41, %v1453_v61  ;;  %vm1561_vm7 = vmor %vm1559_vm6, %vm1560_vm5 }
 0x59b   :  { %v1462_v6 = vsel %vm1459_vm3, %v1461_v62, %v1457_v1  ;;  %v1498_v7 = vsel %vm1497_vm1, %v1937_v44, %v1494_v63  ;;  %v1556_v52 = vsub.f32 1.0, %v1555_v0 }
 0x59c   :  { %v1503_v8 = vsel %vm1500_vm4, %v1502_v43, %v1498_v7  ;;  %v1570_v57 = vmul.f32 %v1941_v3, %v1462_v6 }
 0x59d   :  { %v1569_v10 = vmul.f32 %v1503_v8, %v2597_v4  ;;  %v1557_v15 = vmul.f32 %v1939_v60, %v1556_v52  ;;  %v1641_v23 = vpop.f32.mrf.mxu0 }
 0x59e   :  { %v1642_v51 = vadd.f32 %v2615_v21, %v1641_v23 }
 0x59f   :  { %v1571_v27 = vadd.f32 %v1570_v57, %v1569_v10  ;;  %v1558_v28 = vadd.f32 %v1939_v60, %v1557_v15 }
 0x5a0   :  { %1659 = vst [vmem:[#allocation7 + $0x18] sm:$0xff] %v1642_v51 }
 0x5a1   :  { %1942 = vtanh.f32 %v1571_v27  ;;  %v1562_v2 = vsel %vm1561_vm7, %v1939_v60, %v1558_v28 }
 0x5a2   :  { %v1567_v35 = vsel %vm1564_vm8, %v1566_v32, %v1562_v2 }
 0x5a5   :  { %v1644_v31 = vpop.f32.mrf.mxu0 }
 0x5a6   :  { %v1645_v34 = vadd.f32 %v2615_v21, %v1644_v31 }
 0x5a7   :  { %v1943_v4 = vpop.eup %1942 }
 0x5a8   :  { %v1573_v5 = vmul.f32 %v1943_v4, %v1567_v35  ;;  %1660 = vst [vmem:[#allocation7 + $0x20] sm:$0xff] %v1645_v34 }
 0x5aa   :  { %1574 = vst.msk [vmem:[#allocation3 + $0x38] sm:$0xff] %vm124_vm2, %v1573_v5 }
 0x5ad   :  { %v1647_v9 = vpop.f32.mrf.mxu0 }
 0x5ae   :  { %v1648_v17 = vadd.f32 %v2615_v21, %v1647_v9 }
 0x5b0   :  { %1661 = vst [vmem:[#allocation7 + $0x28] sm:$0xff] %v1648_v17 }
 0x5b1   :  { %v1582_v18 = vld [vmem:[#allocation3 + $0x38] sm:$0xff] }
 0x5b2   :  { %1799 = vmatmul.msk.f32.gmra.mxu0 %vm124_vm2, %v1582_v18 }
 0x5b5   :  { %v1650_v19 = vpop.f32.mrf.mxu0 }
 0x5b6   :  { %v1651_v29 = vadd.f32 %v2615_v21, %v1650_v19 }
 0x5b8   :  { %1662 = vst [vmem:[#allocation7 + $0x30] sm:$0xff] %v1651_v29 }
 0x62f   :  { %v1653_v33 = vpop.f32.mrf.mxu0 }
 0x630   :  { %v1654_v11 = vadd.f32 %v2615_v21, %v1653_v33 }
 0x632   :  { %1663 = vst [vmem:[#allocation7 + $0x38] sm:$0xff] %v1654_v11 }
 0x633   :  { %1676 = dma.vmem_to_hbm [thread:$0]  %s1669_s1, 1024, %s1671_s10, [#allocation6], %s2013_s26, %s2013_s26, %s2014_s27  }
 0x634   :  { %2010 = dma.done.wait [#allocation6], 1024  }
 0x635   :  { %2011 = vsyncadd [#allocation6], 4294966272 }
 0x636   :  { %1681 = vsyncpa [#allocation5], 1 }
 0x637   :  { %1682 = vsyncpa [#allocation6], 1 }

</bundles_post_ra>
